<compile_context>
chip_gen: v7x
topology: tpu7x:2x2x1
jax: 0.10.0
libtpu: 0.0.40
codegen_flags: <defaults>
</compile_context>

<pallas_src>
import math

import jax
import jax.numpy as jnp
import numpy as np
from jax.experimental import pallas as pl
from jax.experimental.pallas import tpu as pltpu

# ----------------------------- configuration -----------------------------
B = 2            # batch
N = 8            # tokens (num_patches)
C = 32           # dim
H = 4            # num_heads
HD = C // H      # head_dim
MLP_HIDDEN = int(C * 4.0)
EPS = 1e-5       # nn.LayerNorm default eps
SCALE = HD ** (-0.5)

BN = B * N
VEC_ROWS, VEC_LANES = 8, 128
assert C <= VEC_LANES and MLP_HIDDEN <= VEC_LANES


def _layernorm(x, gamma, beta):
    mean = jnp.mean(x, axis=-1, keepdims=True)
    var = jnp.mean((x - mean) ** 2, axis=-1, keepdims=True)
    inv = jax.lax.rsqrt(var + EPS)
    return (x - mean) * inv * gamma + beta


def _erf_poly(z):
    # Abramowitz & Stegun 7.1.26 rational approximation, |err| < 1.5e-7.
    a1, a2, a3, a4, a5 = 0.254829592, -0.284496736, 1.421413741, -1.453152027, 1.061405429
    p_ = 0.3275911
    az = jnp.abs(z)
    t = 1.0 / (1.0 + p_ * az)
    poly = ((((a5 * t + a4) * t + a3) * t + a2) * t + a1) * t
    e = poly * jnp.exp(-az * az)
    return jnp.where(z >= 0.0, 1.0 - e, e - 1.0)


def _gelu_exact_kernel(x):
    # erf-based GELU (matches PyTorch nn.GELU() default up to ~1e-7)
    return 0.5 * x * (1.0 + _erf_poly(x * (1.0 / math.sqrt(2.0))))


def _gelu_exact_ref(x):
    return 0.5 * x * (1.0 + jax.lax.erf(x * (1.0 / math.sqrt(2.0))))


# ----------------------------- Pallas kernel -----------------------------
def block_kernel(x_ref, wqkv_ref, wproj_ref, w1_ref, w2_ref, vec_ref,
                 out_ref, attn_ref):
    x = x_ref[...]                                    # (B*N, C) f32

    # packed parameter vectors: one (8,128) slab, sliced by row
    vec = vec_ref[...]
    n1g = vec[0:1, :C]
    n1b = vec[1:2, :C]
    bproj = vec[2:3, :C]
    n2g = vec[3:4, :C]
    n2b = vec[4:5, :C]
    b1 = vec[5:6, :MLP_HIDDEN]
    b2 = vec[6:7, :C]

    # ---- norm1 over the whole (B*N, C) slab (f32) ----
    xn = _layernorm(x, n1g, n1b)

    # ---- fused QKV projection: one (BN,C) x (C,3C) bf16 matmul,
    #      SCALE already folded into the Q columns wrapper-side ----
    qkv = jnp.dot(xn.astype(jnp.bfloat16), wqkv_ref[...],
                  preferred_element_type=jnp.float32)        # (BN, 3C) f32

    # ---- attention: per-head static lane slices; batch B is the einsum batch
    #      dim, so softmax never mixes tokens across the batch ----
    p_parts = []
    o_parts = []
    for h in range(H):
        qh = qkv[:, 0 * C + h * HD: 0 * C + (h + 1) * HD]    # (BN, HD), scaled q
        kh = qkv[:, 1 * C + h * HD: 1 * C + (h + 1) * HD]
        vh = qkv[:, 2 * C + h * HD: 2 * C + (h + 1) * HD]

        qh = qh.reshape(B, N, HD).astype(jnp.bfloat16)       # sublane split: free
        kh = kh.reshape(B, N, HD).astype(jnp.bfloat16)
        vh = vh.reshape(B, N, HD).astype(jnp.bfloat16)

        s = jnp.einsum('bqd,bkd->bqk', qh, kh,
                       preferred_element_type=jnp.float32)   # (B, N, N) f32
        s = s - jnp.max(s, axis=-1, keepdims=True)
        e = jnp.exp(s)
        p = e / jnp.sum(e, axis=-1, keepdims=True)           # exact normalization

        p_parts.append(p.reshape(BN, N))                     # rows = b*N + q

        o = jnp.einsum('bqk,bkd->bqd', p.astype(jnp.bfloat16), vh,
                       preferred_element_type=jnp.float32)   # (B, N, HD) f32
        o_parts.append(o.reshape(BN, HD))

    # 2-D lane-packed attention output: attn2[b*N+q, h*N+k] = p[b,h,q,k]
    attn_ref[...] = jnp.concatenate(p_parts, axis=-1).astype(attn_ref.dtype)

    # ---- single dense output projection over all heads (K = C = 32) ----
    o_full = jnp.concatenate(o_parts, axis=-1)               # (BN, C) f32
    x_new = jnp.dot(o_full.astype(jnp.bfloat16), wproj_ref[...],
                    preferred_element_type=jnp.float32) + bproj

    # ---- residual 1 (drop_path = Identity, adjust_ratio = 1.0) ----
    r1 = x + x_new

    # ---- norm2 + MLP on the full slab ----
    r1n = _layernorm(r1, n2g, n2b)
    h1 = jnp.dot(r1n.astype(jnp.bfloat16), w1_ref[...],
                 preferred_element_type=jnp.float32) + b1
    h1 = _gelu_exact_kernel(h1)
    h2 = jnp.dot(h1.astype(jnp.bfloat16), w2_ref[...],
                 preferred_element_type=jnp.float32) + b2

    # ---- residual 2 ----
    out_ref[...] = (r1 + h2).astype(out_ref.dtype)


# ----------------------------- wrapper -----------------------------
def block_forward(x, params):
    (n1g, n1b, wqkv, wproj, bproj, n2g, n2b, w1, b1, w2, b2) = params

    # fuse the qkv weight into a single lane-dense (C, 3C) matrix; fold the
    # softmax scale into the q columns; cast matmul weights to bf16.
    wqkv_s = jnp.concatenate([wqkv[:, :C] * SCALE, wqkv[:, C:]], axis=1)
    wqkv_bf = wqkv_s.astype(jnp.bfloat16)                    # (C, 3C)
    wproj_bf = wproj.astype(jnp.bfloat16)                    # (C, C)
    w1_bf = w1.astype(jnp.bfloat16)                          # (C, MLP_HIDDEN)
    w2_bf = w2.astype(jnp.bfloat16)                          # (MLP_HIDDEN, C)

    # pack the 7 small vectors into a single (8, 128) f32 slab -> one DMA
    vec = jnp.zeros((VEC_ROWS, VEC_LANES), jnp.float32)
    vec = vec.at[0, :C].set(n1g)
    vec = vec.at[1, :C].set(n1b)
    vec = vec.at[2, :C].set(bproj)
    vec = vec.at[3, :C].set(n2g)
    vec = vec.at[4, :C].set(n2b)
    vec = vec.at[5, :MLP_HIDDEN].set(b1)
    vec = vec.at[6, :C].set(b2)

    x2d = x.reshape(BN, C)

    full = lambda nd: (lambda i: (0,) * nd)

    out2d, attn2d = pl.pallas_call(
        block_kernel,
        out_shape=(
            jax.ShapeDtypeStruct((BN, C), jnp.float32),
            jax.ShapeDtypeStruct((BN, H * N), jnp.float32),
        ),
        grid_spec=pltpu.PrefetchScalarGridSpec(
            num_scalar_prefetch=0,
            grid=(1,),                                  # single step: whole batch
            in_specs=[
                pl.BlockSpec((BN, C), full(2)),                  # x slab
                pl.BlockSpec((C, 3 * C), full(2)),               # fused qkv W (bf16)
                pl.BlockSpec((C, C), full(2)),                   # proj W (bf16)
                pl.BlockSpec((C, MLP_HIDDEN), full(2)),          # fc1 W (bf16)
                pl.BlockSpec((MLP_HIDDEN, C), full(2)),          # fc2 W (bf16)
                pl.BlockSpec((VEC_ROWS, VEC_LANES), full(2)),    # packed vectors
            ],
            out_specs=[
                pl.BlockSpec((BN, C), full(2)),
                pl.BlockSpec((BN, H * N), full(2)),
            ],
        ),
        compiler_params=pltpu.CompilerParams(
            dimension_semantics=("arbitrary",)),
    )(x2d, wqkv_bf, wproj_bf, w1_bf, w2_bf, vec)

    out = out2d.reshape(B, N, C)
    # attn2d[b*N+q, h*N+k] -> (B, H, N, N); wrapper-side reshape/transpose is free
    attn = attn2d.reshape(B, N, H, N).transpose(0, 2, 1, 3)
    return out, attn


# ----------------------------- pure-JAX reference -----------------------------
def block_reference(x, params):
    (n1g, n1b, wqkv, wproj, bproj, n2g, n2b, w1, b1, w2, b2) = params

    def ln(t, g, b_):
        m = jnp.mean(t, axis=-1, keepdims=True)
        v = jnp.mean((t - m) ** 2, axis=-1, keepdims=True)
        return (t - m) / jnp.sqrt(v + EPS) * g + b_

    xn = ln(x, n1g, n1b)
    qkv = xn @ wqkv                                        # (B, N, 3C)
    qkv = qkv.reshape(B, N, 3, H, HD).transpose(2, 0, 3, 1, 4)
    q, k, v = qkv[0], qkv[1], qkv[2]                       # (B, H, N, HD)
    s = jnp.einsum("bhqd,bhkd->bhqk", q, k) * SCALE
    attn = jax.nn.softmax(s, axis=-1)
    ao = jnp.einsum("bhqk,bhkd->bhqd", attn, v)
    ao = ao.transpose(0, 2, 1, 3).reshape(B, N, C)
    x_new = ao @ wproj + bproj
    r1 = x + x_new
    r1n = ln(r1, n2g, n2b)
    h1 = _gelu_exact_ref(r1n @ w1 + b1)
    h2 = h1 @ w2 + b2
    return r1 + h2, attn


if __name__ == "__main__":
    key = jax.random.PRNGKey(0)
    ks = jax.random.split(key, 8)

    x = jax.random.normal(ks[0], (B, N, C), dtype=jnp.float32)

    # deterministic synthetic parameters (nn.Linear weights stored pre-transposed)
    n1g = jnp.ones((C,), jnp.float32)
    n1b = jnp.zeros((C,), jnp.float32)
    wqkv = 0.02 * jax.random.normal(ks[1], (C, 3 * C), jnp.float32)
    wproj = 0.02 * jax.random.normal(ks[2], (C, C), jnp.float32)
    bproj = 0.01 * jax.random.normal(ks[3], (C,), jnp.float32)
    n2g = jnp.ones((C,), jnp.float32)
    n2b = jnp.zeros((C,), jnp.float32)
    w1 = 0.02 * jax.random.normal(ks[4], (C, MLP_HIDDEN), jnp.float32)
    b1 = 0.01 * jax.random.normal(ks[5], (MLP_HIDDEN,), jnp.float32)
    w2 = 0.02 * jax.random.normal(ks[6], (MLP_HIDDEN, C), jnp.float32)
    b2 = 0.01 * jax.random.normal(ks[7], (C,), jnp.float32)

    params = (n1g, n1b, wqkv, wproj, bproj, n2g, n2b, w1, b1, w2, b2)

    out, attn = block_forward(x, params)
    out = jax.block_until_ready(out)
    attn = jax.block_until_ready(attn)

    ref_out, ref_attn = block_reference(x, params)
    # tolerance accounts for bf16 matmul operands (f32 accumulation, f32 elementwise)
    np.testing.assert_allclose(np.asarray(out), np.asarray(ref_out), rtol=1e-2, atol=1e-2)
    np.testing.assert_allclose(np.asarray(attn), np.asarray(ref_attn), rtol=1e-2, atol=1e-2)

    print("KERNEL_OK")
</pallas_src>

<mosaic_0001>
module attributes {stable_mosaic.version = 11 : i64} {
  func.func @block_kernel(%arg0: i32, %arg1: memref<16x32xf32, #tpu.memory_space<vmem>>, %arg2: memref<32x96xbf16, #tpu.memory_space<vmem>>, %arg3: memref<32x32xbf16, #tpu.memory_space<vmem>>, %arg4: memref<32x128xbf16, #tpu.memory_space<vmem>>, %arg5: memref<128x32xbf16, #tpu.memory_space<vmem>>, %arg6: memref<8x128xf32, #tpu.memory_space<vmem>>, %arg7: memref<16x32xf32, #tpu.memory_space<vmem>>, %arg8: memref<16x32xf32, #tpu.memory_space<vmem>>) attributes {dimension_semantics = [#tpu.dimension_semantics<arbitrary>], iteration_bounds = array<i64: 1>, scalar_prefetch = 0 : i64, scratch_operands = 0 : i64, tpu.core_type = #tpu.core_type<tc>, window_params = [{pipeline_mode = #tpu.pipeline_mode<synchronous>, transform_indices = @transform_0, window_bounds = array<i64: 16, 32>}, {pipeline_mode = #tpu.pipeline_mode<synchronous>, transform_indices = @transform_1, window_bounds = array<i64: 32, 96>}, {pipeline_mode = #tpu.pipeline_mode<synchronous>, transform_indices = @transform_2, window_bounds = array<i64: 32, 32>}, {pipeline_mode = #tpu.pipeline_mode<synchronous>, transform_indices = @transform_3, window_bounds = array<i64: 32, 128>}, {pipeline_mode = #tpu.pipeline_mode<synchronous>, transform_indices = @transform_4, window_bounds = array<i64: 128, 32>}, {pipeline_mode = #tpu.pipeline_mode<synchronous>, transform_indices = @transform_5, window_bounds = array<i64: 8, 128>}, {pipeline_mode = #tpu.pipeline_mode<synchronous>, transform_indices = @transform_6, window_bounds = array<i64: 16, 32>}, {pipeline_mode = #tpu.pipeline_mode<synchronous>, transform_indices = @transform_7, window_bounds = array<i64: 16, 32>}]} {
    %c0 = arith.constant 0 : index
    %c0_0 = arith.constant 0 : index
    %0 = vector.load %arg1[%c0, %c0_0] : memref<16x32xf32, #tpu.memory_space<vmem>>, vector<16x32xf32>
    %c0_1 = arith.constant 0 : index
    %c0_2 = arith.constant 0 : index
    %1 = vector.load %arg6[%c0_1, %c0_2] : memref<8x128xf32, #tpu.memory_space<vmem>>, vector<8x128xf32>
    %2 = vector.extract_strided_slice %1 {offsets = [0, 0], sizes = [1, 32], strides = [1, 1]} : vector<8x128xf32> to vector<1x32xf32>
    %3 = vector.extract_strided_slice %1 {offsets = [1, 0], sizes = [1, 32], strides = [1, 1]} : vector<8x128xf32> to vector<1x32xf32>
    %4 = vector.extract_strided_slice %1 {offsets = [2, 0], sizes = [1, 32], strides = [1, 1]} : vector<8x128xf32> to vector<1x32xf32>
    %5 = vector.extract_strided_slice %1 {offsets = [3, 0], sizes = [1, 32], strides = [1, 1]} : vector<8x128xf32> to vector<1x32xf32>
    %6 = vector.extract_strided_slice %1 {offsets = [4, 0], sizes = [1, 32], strides = [1, 1]} : vector<8x128xf32> to vector<1x32xf32>
    %7 = vector.extract_strided_slice %1 {offsets = [5, 0], sizes = [1, 128], strides = [1, 1]} : vector<8x128xf32> to vector<1x128xf32>
    %8 = vector.extract_strided_slice %1 {offsets = [6, 0], sizes = [1, 32], strides = [1, 1]} : vector<8x128xf32> to vector<1x32xf32>
    %cst = arith.constant dense<0.000000e+00> : vector<16xf32>
    %9 = vector.multi_reduction <add>, %0, %cst [1] : vector<16x32xf32> to vector<16xf32>
    %10 = vector.shape_cast %9 : vector<16xf32> to vector<16x1xf32>
    %cst_3 = arith.constant 3.200000e+01 : f32
    %11 = vector.broadcast %cst_3 : f32 to vector<16x1xf32>
    %12 = arith.divf %10, %11 : vector<16x1xf32>
    %13 = vector.broadcast %12 : vector<16x1xf32> to vector<16x32xf32>
    %14 = arith.subf %0, %13 : vector<16x32xf32>
    %15 = arith.mulf %14, %14 : vector<16x32xf32>
    %cst_4 = arith.constant dense<0.000000e+00> : vector<16xf32>
    %16 = vector.multi_reduction <add>, %15, %cst_4 [1] : vector<16x32xf32> to vector<16xf32>
    %17 = vector.shape_cast %16 : vector<16xf32> to vector<16x1xf32>
    %cst_5 = arith.constant 3.200000e+01 : f32
    %18 = vector.broadcast %cst_5 : f32 to vector<16x1xf32>
    %19 = arith.divf %17, %18 : vector<16x1xf32>
    %cst_6 = arith.constant 9.99999974E-6 : f32
    %20 = vector.broadcast %cst_6 : f32 to vector<16x1xf32>
    %21 = arith.addf %19, %20 : vector<16x1xf32>
    %22 = math.rsqrt %21 : vector<16x1xf32>
    %23 = vector.broadcast %12 : vector<16x1xf32> to vector<16x32xf32>
    %24 = arith.subf %0, %23 : vector<16x32xf32>
    %25 = vector.broadcast %22 : vector<16x1xf32> to vector<16x32xf32>
    %26 = arith.mulf %24, %25 : vector<16x32xf32>
    %27 = vector.broadcast %2 : vector<1x32xf32> to vector<16x32xf32>
    %28 = arith.mulf %26, %27 : vector<16x32xf32>
    %29 = vector.broadcast %3 : vector<1x32xf32> to vector<16x32xf32>
    %30 = arith.addf %28, %29 : vector<16x32xf32>
    %31 = arith.truncf %30 : vector<16x32xf32> to vector<16x32xbf16>
    %c0_7 = arith.constant 0 : index
    %c0_8 = arith.constant 0 : index
    %32 = vector.load %arg2[%c0_7, %c0_8] : memref<32x96xbf16, #tpu.memory_space<vmem>>, vector<32x96xbf16>
    %cst_9 = arith.constant dense<0.000000e+00> : vector<16x96xf32>
    %33 = tpu.matmul %31, %32, %cst_9 {dimension_numbers = #tpu.dot_dimension_numbers<[1], [0], [0], [1], [0, 0, 1, 1], [], []>} : vector<16x32xbf16>, vector<32x96xbf16>, vector<16x96xf32> -> vector<16x96xf32>
    %34 = vector.extract_strided_slice %33 {offsets = [0, 0], sizes = [16, 8], strides = [1, 1]} : vector<16x96xf32> to vector<16x8xf32>
    %35 = vector.extract_strided_slice %33 {offsets = [0, 32], sizes = [16, 8], strides = [1, 1]} : vector<16x96xf32> to vector<16x8xf32>
    %36 = vector.extract_strided_slice %33 {offsets = [0, 64], sizes = [16, 8], strides = [1, 1]} : vector<16x96xf32> to vector<16x8xf32>
    %37 = vector.shape_cast %34 : vector<16x8xf32> to vector<2x8x8xf32>
    %38 = arith.truncf %37 : vector<2x8x8xf32> to vector<2x8x8xbf16>
    %39 = vector.shape_cast %35 : vector<16x8xf32> to vector<2x8x8xf32>
    %40 = arith.truncf %39 : vector<2x8x8xf32> to vector<2x8x8xbf16>
    %41 = vector.shape_cast %36 : vector<16x8xf32> to vector<2x8x8xf32>
    %42 = arith.truncf %41 : vector<2x8x8xf32> to vector<2x8x8xbf16>
    "tpu.trace_start"() <{level = 10 : i32, message = "bqd,bkd->bqk"}> : () -> ()
    %cst_10 = arith.constant dense<0.000000e+00> : vector<2x8x8xf32>
    %43 = tpu.matmul %38, %40, %cst_10 {dimension_numbers = #tpu.dot_dimension_numbers<[2], [2], [1], [1], [0, 0, 0, 1, 1, 1], [0], [0]>} : vector<2x8x8xbf16>, vector<2x8x8xbf16>, vector<2x8x8xf32> -> vector<2x8x8xf32>
    "tpu.trace_stop"() : () -> ()
    %cst_11 = arith.constant dense<0xFF800000> : vector<2x8xf32>
    %44 = vector.multi_reduction <maximumf>, %43, %cst_11 [2] : vector<2x8x8xf32> to vector<2x8xf32>
    %45 = vector.shape_cast %44 : vector<2x8xf32> to vector<2x8x1xf32>
    %46 = vector.broadcast %45 : vector<2x8x1xf32> to vector<2x8x8xf32>
    %47 = arith.subf %43, %46 : vector<2x8x8xf32>
    %48 = math.exp %47 : vector<2x8x8xf32>
    %cst_12 = arith.constant dense<0.000000e+00> : vector<2x8xf32>
    %49 = vector.multi_reduction <add>, %48, %cst_12 [2] : vector<2x8x8xf32> to vector<2x8xf32>
    %50 = vector.shape_cast %49 : vector<2x8xf32> to vector<2x8x1xf32>
    %51 = vector.broadcast %50 : vector<2x8x1xf32> to vector<2x8x8xf32>
    %52 = arith.divf %48, %51 : vector<2x8x8xf32>
    %53 = vector.shape_cast %52 : vector<2x8x8xf32> to vector<16x8xf32>
    %54 = arith.truncf %52 : vector<2x8x8xf32> to vector<2x8x8xbf16>
    "tpu.trace_start"() <{level = 10 : i32, message = "bqk,bkd->bqd"}> : () -> ()
    %cst_13 = arith.constant dense<0.000000e+00> : vector<2x8x8xf32>
    %55 = tpu.matmul %54, %42, %cst_13 {dimension_numbers = #tpu.dot_dimension_numbers<[2], [1], [1], [2], [0, 0, 0, 1, 1, 2], [0], [0]>} : vector<2x8x8xbf16>, vector<2x8x8xbf16>, vector<2x8x8xf32> -> vector<2x8x8xf32>
    "tpu.trace_stop"() : () -> ()
    %56 = vector.shape_cast %55 : vector<2x8x8xf32> to vector<16x8xf32>
    %57 = vector.extract_strided_slice %33 {offsets = [0, 8], sizes = [16, 8], strides = [1, 1]} : vector<16x96xf32> to vector<16x8xf32>
    %58 = vector.extract_strided_slice %33 {offsets = [0, 40], sizes = [16, 8], strides = [1, 1]} : vector<16x96xf32> to vector<16x8xf32>
    %59 = vector.extract_strided_slice %33 {offsets = [0, 72], sizes = [16, 8], strides = [1, 1]} : vector<16x96xf32> to vector<16x8xf32>
    %60 = vector.shape_cast %57 : vector<16x8xf32> to vector<2x8x8xf32>
    %61 = arith.truncf %60 : vector<2x8x8xf32> to vector<2x8x8xbf16>
    %62 = vector.shape_cast %58 : vector<16x8xf32> to vector<2x8x8xf32>
    %63 = arith.truncf %62 : vector<2x8x8xf32> to vector<2x8x8xbf16>
    %64 = vector.shape_cast %59 : vector<16x8xf32> to vector<2x8x8xf32>
    %65 = arith.truncf %64 : vector<2x8x8xf32> to vector<2x8x8xbf16>
    "tpu.trace_start"() <{level = 10 : i32, message = "bqd,bkd->bqk"}> : () -> ()
    %cst_14 = arith.constant dense<0.000000e+00> : vector<2x8x8xf32>
    %66 = tpu.matmul %61, %63, %cst_14 {dimension_numbers = #tpu.dot_dimension_numbers<[2], [2], [1], [1], [0, 0, 0, 1, 1, 1], [0], [0]>} : vector<2x8x8xbf16>, vector<2x8x8xbf16>, vector<2x8x8xf32> -> vector<2x8x8xf32>
    "tpu.trace_stop"() : () -> ()
    %cst_15 = arith.constant dense<0xFF800000> : vector<2x8xf32>
    %67 = vector.multi_reduction <maximumf>, %66, %cst_15 [2] : vector<2x8x8xf32> to vector<2x8xf32>
    %68 = vector.shape_cast %67 : vector<2x8xf32> to vector<2x8x1xf32>
    %69 = vector.broadcast %68 : vector<2x8x1xf32> to vector<2x8x8xf32>
    %70 = arith.subf %66, %69 : vector<2x8x8xf32>
    %71 = math.exp %70 : vector<2x8x8xf32>
    %cst_16 = arith.constant dense<0.000000e+00> : vector<2x8xf32>
    %72 = vector.multi_reduction <add>, %71, %cst_16 [2] : vector<2x8x8xf32> to vector<2x8xf32>
    %73 = vector.shape_cast %72 : vector<2x8xf32> to vector<2x8x1xf32>
    %74 = vector.broadcast %73 : vector<2x8x1xf32> to vector<2x8x8xf32>
    %75 = arith.divf %71, %74 : vector<2x8x8xf32>
    %76 = vector.shape_cast %75 : vector<2x8x8xf32> to vector<16x8xf32>
    %77 = arith.truncf %75 : vector<2x8x8xf32> to vector<2x8x8xbf16>
    "tpu.trace_start"() <{level = 10 : i32, message = "bqk,bkd->bqd"}> : () -> ()
    %cst_17 = arith.constant dense<0.000000e+00> : vector<2x8x8xf32>
    %78 = tpu.matmul %77, %65, %cst_17 {dimension_numbers = #tpu.dot_dimension_numbers<[2], [1], [1], [2], [0, 0, 0, 1, 1, 2], [0], [0]>} : vector<2x8x8xbf16>, vector<2x8x8xbf16>, vector<2x8x8xf32> -> vector<2x8x8xf32>
    "tpu.trace_stop"() : () -> ()
    %79 = vector.shape_cast %78 : vector<2x8x8xf32> to vector<16x8xf32>
    %80 = vector.extract_strided_slice %33 {offsets = [0, 16], sizes = [16, 8], strides = [1, 1]} : vector<16x96xf32> to vector<16x8xf32>
    %81 = vector.extract_strided_slice %33 {offsets = [0, 48], sizes = [16, 8], strides = [1, 1]} : vector<16x96xf32> to vector<16x8xf32>
    %82 = vector.extract_strided_slice %33 {offsets = [0, 80], sizes = [16, 8], strides = [1, 1]} : vector<16x96xf32> to vector<16x8xf32>
    %83 = vector.shape_cast %80 : vector<16x8xf32> to vector<2x8x8xf32>
    %84 = arith.truncf %83 : vector<2x8x8xf32> to vector<2x8x8xbf16>
    %85 = vector.shape_cast %81 : vector<16x8xf32> to vector<2x8x8xf32>
    %86 = arith.truncf %85 : vector<2x8x8xf32> to vector<2x8x8xbf16>
    %87 = vector.shape_cast %82 : vector<16x8xf32> to vector<2x8x8xf32>
    %88 = arith.truncf %87 : vector<2x8x8xf32> to vector<2x8x8xbf16>
    "tpu.trace_start"() <{level = 10 : i32, message = "bqd,bkd->bqk"}> : () -> ()
    %cst_18 = arith.constant dense<0.000000e+00> : vector<2x8x8xf32>
    %89 = tpu.matmul %84, %86, %cst_18 {dimension_numbers = #tpu.dot_dimension_numbers<[2], [2], [1], [1], [0, 0, 0, 1, 1, 1], [0], [0]>} : vector<2x8x8xbf16>, vector<2x8x8xbf16>, vector<2x8x8xf32> -> vector<2x8x8xf32>
    "tpu.trace_stop"() : () -> ()
    %cst_19 = arith.constant dense<0xFF800000> : vector<2x8xf32>
    %90 = vector.multi_reduction <maximumf>, %89, %cst_19 [2] : vector<2x8x8xf32> to vector<2x8xf32>
    %91 = vector.shape_cast %90 : vector<2x8xf32> to vector<2x8x1xf32>
    %92 = vector.broadcast %91 : vector<2x8x1xf32> to vector<2x8x8xf32>
    %93 = arith.subf %89, %92 : vector<2x8x8xf32>
    %94 = math.exp %93 : vector<2x8x8xf32>
    %cst_20 = arith.constant dense<0.000000e+00> : vector<2x8xf32>
    %95 = vector.multi_reduction <add>, %94, %cst_20 [2] : vector<2x8x8xf32> to vector<2x8xf32>
    %96 = vector.shape_cast %95 : vector<2x8xf32> to vector<2x8x1xf32>
    %97 = vector.broadcast %96 : vector<2x8x1xf32> to vector<2x8x8xf32>
    %98 = arith.divf %94, %97 : vector<2x8x8xf32>
    %99 = vector.shape_cast %98 : vector<2x8x8xf32> to vector<16x8xf32>
    %100 = arith.truncf %98 : vector<2x8x8xf32> to vector<2x8x8xbf16>
    "tpu.trace_start"() <{level = 10 : i32, message = "bqk,bkd->bqd"}> : () -> ()
    %cst_21 = arith.constant dense<0.000000e+00> : vector<2x8x8xf32>
    %101 = tpu.matmul %100, %88, %cst_21 {dimension_numbers = #tpu.dot_dimension_numbers<[2], [1], [1], [2], [0, 0, 0, 1, 1, 2], [0], [0]>} : vector<2x8x8xbf16>, vector<2x8x8xbf16>, vector<2x8x8xf32> -> vector<2x8x8xf32>
    "tpu.trace_stop"() : () -> ()
    %102 = vector.shape_cast %101 : vector<2x8x8xf32> to vector<16x8xf32>
    %103 = vector.extract_strided_slice %33 {offsets = [0, 24], sizes = [16, 8], strides = [1, 1]} : vector<16x96xf32> to vector<16x8xf32>
    %104 = vector.extract_strided_slice %33 {offsets = [0, 56], sizes = [16, 8], strides = [1, 1]} : vector<16x96xf32> to vector<16x8xf32>
    %105 = vector.extract_strided_slice %33 {offsets = [0, 88], sizes = [16, 8], strides = [1, 1]} : vector<16x96xf32> to vector<16x8xf32>
    %106 = vector.shape_cast %103 : vector<16x8xf32> to vector<2x8x8xf32>
    %107 = arith.truncf %106 : vector<2x8x8xf32> to vector<2x8x8xbf16>
    %108 = vector.shape_cast %104 : vector<16x8xf32> to vector<2x8x8xf32>
    %109 = arith.truncf %108 : vector<2x8x8xf32> to vector<2x8x8xbf16>
    %110 = vector.shape_cast %105 : vector<16x8xf32> to vector<2x8x8xf32>
    %111 = arith.truncf %110 : vector<2x8x8xf32> to vector<2x8x8xbf16>
    "tpu.trace_start"() <{level = 10 : i32, message = "bqd,bkd->bqk"}> : () -> ()
    %cst_22 = arith.constant dense<0.000000e+00> : vector<2x8x8xf32>
    %112 = tpu.matmul %107, %109, %cst_22 {dimension_numbers = #tpu.dot_dimension_numbers<[2], [2], [1], [1], [0, 0, 0, 1, 1, 1], [0], [0]>} : vector<2x8x8xbf16>, vector<2x8x8xbf16>, vector<2x8x8xf32> -> vector<2x8x8xf32>
    "tpu.trace_stop"() : () -> ()
    %cst_23 = arith.constant dense<0xFF800000> : vector<2x8xf32>
    %113 = vector.multi_reduction <maximumf>, %112, %cst_23 [2] : vector<2x8x8xf32> to vector<2x8xf32>
    %114 = vector.shape_cast %113 : vector<2x8xf32> to vector<2x8x1xf32>
    %115 = vector.broadcast %114 : vector<2x8x1xf32> to vector<2x8x8xf32>
    %116 = arith.subf %112, %115 : vector<2x8x8xf32>
    %117 = math.exp %116 : vector<2x8x8xf32>
    %cst_24 = arith.constant dense<0.000000e+00> : vector<2x8xf32>
    %118 = vector.multi_reduction <add>, %117, %cst_24 [2] : vector<2x8x8xf32> to vector<2x8xf32>
    %119 = vector.shape_cast %118 : vector<2x8xf32> to vector<2x8x1xf32>
    %120 = vector.broadcast %119 : vector<2x8x1xf32> to vector<2x8x8xf32>
    %121 = arith.divf %117, %120 : vector<2x8x8xf32>
    %122 = vector.shape_cast %121 : vector<2x8x8xf32> to vector<16x8xf32>
    %123 = arith.truncf %121 : vector<2x8x8xf32> to vector<2x8x8xbf16>
    "tpu.trace_start"() <{level = 10 : i32, message = "bqk,bkd->bqd"}> : () -> ()
    %cst_25 = arith.constant dense<0.000000e+00> : vector<2x8x8xf32>
    %124 = tpu.matmul %123, %111, %cst_25 {dimension_numbers = #tpu.dot_dimension_numbers<[2], [1], [1], [2], [0, 0, 0, 1, 1, 2], [0], [0]>} : vector<2x8x8xbf16>, vector<2x8x8xbf16>, vector<2x8x8xf32> -> vector<2x8x8xf32>
    "tpu.trace_stop"() : () -> ()
    %125 = vector.shape_cast %124 : vector<2x8x8xf32> to vector<16x8xf32>
    %126 = tpu.concatenate %53, %76, %99, %122 in 1 : vector<16x8xf32>, vector<16x8xf32>, vector<16x8xf32>, vector<16x8xf32> -> vector<16x32xf32>
    %c0_26 = arith.constant 0 : index
    %c0_27 = arith.constant 0 : index
    %127 = vector.load %arg8[%c0_26, %c0_27] : memref<16x32xf32, #tpu.memory_space<vmem>>, vector<16x32xf32>
    tpu.vector_store %arg8[%c0_26, %c0_27], %126 {strides = array<i32>} : memref<16x32xf32, #tpu.memory_space<vmem>>, vector<16x32xf32>,
    %128 = tpu.concatenate %56, %79, %102, %125 in 1 : vector<16x8xf32>, vector<16x8xf32>, vector<16x8xf32>, vector<16x8xf32> -> vector<16x32xf32>
    %129 = arith.truncf %128 : vector<16x32xf32> to vector<16x32xbf16>
    %c0_28 = arith.constant 0 : index
    %c0_29 = arith.constant 0 : index
    %130 = vector.load %arg3[%c0_28, %c0_29] : memref<32x32xbf16, #tpu.memory_space<vmem>>, vector<32x32xbf16>
    %cst_30 = arith.constant dense<0.000000e+00> : vector<16x32xf32>
    %131 = tpu.matmul %129, %130, %cst_30 {dimension_numbers = #tpu.dot_dimension_numbers<[1], [0], [0], [1], [0, 0, 1, 1], [], []>} : vector<16x32xbf16>, vector<32x32xbf16>, vector<16x32xf32> -> vector<16x32xf32>
    %132 = vector.broadcast %4 : vector<1x32xf32> to vector<16x32xf32>
    %133 = arith.addf %131, %132 : vector<16x32xf32>
    %134 = arith.addf %0, %133 : vector<16x32xf32>
    %cst_31 = arith.constant dense<0.000000e+00> : vector<16xf32>
    %135 = vector.multi_reduction <add>, %134, %cst_31 [1] : vector<16x32xf32> to vector<16xf32>
    %136 = vector.shape_cast %135 : vector<16xf32> to vector<16x1xf32>
    %cst_32 = arith.constant 3.200000e+01 : f32
    %137 = vector.broadcast %cst_32 : f32 to vector<16x1xf32>
    %138 = arith.divf %136, %137 : vector<16x1xf32>
    %139 = vector.broadcast %138 : vector<16x1xf32> to vector<16x32xf32>
    %140 = arith.subf %134, %139 : vector<16x32xf32>
    %141 = arith.mulf %140, %140 : vector<16x32xf32>
    %cst_33 = arith.constant dense<0.000000e+00> : vector<16xf32>
    %142 = vector.multi_reduction <add>, %141, %cst_33 [1] : vector<16x32xf32> to vector<16xf32>
    %143 = vector.shape_cast %142 : vector<16xf32> to vector<16x1xf32>
    %cst_34 = arith.constant 3.200000e+01 : f32
    %144 = vector.broadcast %cst_34 : f32 to vector<16x1xf32>
    %145 = arith.divf %143, %144 : vector<16x1xf32>
    %cst_35 = arith.constant 9.99999974E-6 : f32
    %146 = vector.broadcast %cst_35 : f32 to vector<16x1xf32>
    %147 = arith.addf %145, %146 : vector<16x1xf32>
    %148 = math.rsqrt %147 : vector<16x1xf32>
    %149 = vector.broadcast %138 : vector<16x1xf32> to vector<16x32xf32>
    %150 = arith.subf %134, %149 : vector<16x32xf32>
    %151 = vector.broadcast %148 : vector<16x1xf32> to vector<16x32xf32>
    %152 = arith.mulf %150, %151 : vector<16x32xf32>
    %153 = vector.broadcast %5 : vector<1x32xf32> to vector<16x32xf32>
    %154 = arith.mulf %152, %153 : vector<16x32xf32>
    %155 = vector.broadcast %6 : vector<1x32xf32> to vector<16x32xf32>
    %156 = arith.addf %154, %155 : vector<16x32xf32>
    %157 = arith.truncf %156 : vector<16x32xf32> to vector<16x32xbf16>
    %c0_36 = arith.constant 0 : index
    %c0_37 = arith.constant 0 : index
    %158 = vector.load %arg4[%c0_36, %c0_37] : memref<32x128xbf16, #tpu.memory_space<vmem>>, vector<32x128xbf16>
    %cst_38 = arith.constant dense<0.000000e+00> : vector<16x128xf32>
    %159 = tpu.matmul %157, %158, %cst_38 {dimension_numbers = #tpu.dot_dimension_numbers<[1], [0], [0], [1], [0, 0, 1, 1], [], []>} : vector<16x32xbf16>, vector<32x128xbf16>, vector<16x128xf32> -> vector<16x128xf32>
    %160 = vector.broadcast %7 : vector<1x128xf32> to vector<16x128xf32>
    %161 = arith.addf %159, %160 : vector<16x128xf32>
    %cst_39 = arith.constant 5.000000e-01 : f32
    %162 = vector.broadcast %cst_39 : f32 to vector<16x128xf32>
    %163 = arith.mulf %162, %161 : vector<16x128xf32>
    %cst_40 = arith.constant 0.707106769 : f32
    %164 = vector.broadcast %cst_40 : f32 to vector<16x128xf32>
    %165 = arith.mulf %161, %164 : vector<16x128xf32>
    %166 = math.absf %165 : vector<16x128xf32>
    %cst_41 = arith.constant 0.327591091 : f32
    %167 = vector.broadcast %cst_41 : f32 to vector<16x128xf32>
    %168 = arith.mulf %167, %166 : vector<16x128xf32>
    %cst_42 = arith.constant 1.000000e+00 : f32
    %169 = vector.broadcast %cst_42 : f32 to vector<16x128xf32>
    %170 = arith.addf %169, %168 : vector<16x128xf32>
    %cst_43 = arith.constant 1.000000e+00 : f32
    %171 = vector.broadcast %cst_43 : f32 to vector<16x128xf32>
    %172 = arith.divf %171, %170 : vector<16x128xf32>
    %cst_44 = arith.constant 1.06140542 : f32
    %173 = vector.broadcast %cst_44 : f32 to vector<16x128xf32>
    %174 = arith.mulf %173, %172 : vector<16x128xf32>
    %cst_45 = arith.constant -1.45315206 : f32
    %175 = vector.broadcast %cst_45 : f32 to vector<16x128xf32>
    %176 = arith.addf %174, %175 : vector<16x128xf32>
    %177 = arith.mulf %176, %172 : vector<16x128xf32>
    %cst_46 = arith.constant 1.42141378 : f32
    %178 = vector.broadcast %cst_46 : f32 to vector<16x128xf32>
    %179 = arith.addf %177, %178 : vector<16x128xf32>
    %180 = arith.mulf %179, %172 : vector<16x128xf32>
    %cst_47 = arith.constant -0.284496725 : f32
    %181 = vector.broadcast %cst_47 : f32 to vector<16x128xf32>
    %182 = arith.addf %180, %181 : vector<16x128xf32>
    %183 = arith.mulf %182, %172 : vector<16x128xf32>
    %cst_48 = arith.constant 0.254829586 : f32
    %184 = vector.broadcast %cst_48 : f32 to vector<16x128xf32>
    %185 = arith.addf %183, %184 : vector<16x128xf32>
    %186 = arith.mulf %185, %172 : vector<16x128xf32>
    %cst_49 = arith.constant 0.000000e+00 : f32
    %187 = vector.broadcast %cst_49 : f32 to vector<16x128xf32>
    %188 = arith.subf %187, %166 : vector<16x128xf32>
    %189 = arith.mulf %188, %166 : vector<16x128xf32>
    %190 = math.exp %189 : vector<16x128xf32>
    %191 = arith.mulf %186, %190 : vector<16x128xf32>
    %cst_50 = arith.constant 0.000000e+00 : f32
    %192 = vector.broadcast %cst_50 : f32 to vector<16x128xf32>
    %193 = arith.cmpf oge, %165, %192 : vector<16x128xf32>
    %cst_51 = arith.constant 1.000000e+00 : f32
    %194 = vector.broadcast %cst_51 : f32 to vector<16x128xf32>
    %195 = arith.subf %194, %191 : vector<16x128xf32>
    %cst_52 = arith.constant 1.000000e+00 : f32
    %196 = vector.broadcast %cst_52 : f32 to vector<16x128xf32>
    %197 = arith.subf %191, %196 : vector<16x128xf32>
    %198 = arith.select %193, %195, %197 : vector<16x128xi1>, vector<16x128xf32>
    %cst_53 = arith.constant 1.000000e+00 : f32
    %199 = vector.broadcast %cst_53 : f32 to vector<16x128xf32>
    %200 = arith.addf %199, %198 : vector<16x128xf32>
    %201 = arith.mulf %163, %200 : vector<16x128xf32>
    %202 = arith.truncf %201 : vector<16x128xf32> to vector<16x128xbf16>
    %c0_54 = arith.constant 0 : index
    %c0_55 = arith.constant 0 : index
    %203 = vector.load %arg5[%c0_54, %c0_55] : memref<128x32xbf16, #tpu.memory_space<vmem>>, vector<128x32xbf16>
    %cst_56 = arith.constant dense<0.000000e+00> : vector<16x32xf32>
    %204 = tpu.matmul %202, %203, %cst_56 {dimension_numbers = #tpu.dot_dimension_numbers<[1], [0], [0], [1], [0, 0, 1, 1], [], []>} : vector<16x128xbf16>, vector<128x32xbf16>, vector<16x32xf32> -> vector<16x32xf32>
    %205 = vector.broadcast %8 : vector<1x32xf32> to vector<16x32xf32>
    %206 = arith.addf %204, %205 : vector<16x32xf32>
    %207 = arith.addf %134, %206 : vector<16x32xf32>
    %c0_57 = arith.constant 0 : index
    %c0_58 = arith.constant 0 : index
    %208 = vector.load %arg7[%c0_57, %c0_58] : memref<16x32xf32, #tpu.memory_space<vmem>>, vector<16x32xf32>
    tpu.vector_store %arg7[%c0_57, %c0_58], %207 {strides = array<i32>} : memref<16x32xf32, #tpu.memory_space<vmem>>, vector<16x32xf32>,
    return
  }
  func.func @transform_0(%arg0: i32) -> (i32, i32) {
    %c0_i32 = arith.constant 0 : i32
    %c0_i32_0 = arith.constant 0 : i32
    %c0_i32_1 = arith.constant 0 : i32
    return %c0_i32, %c0_i32_0 : i32, i32
  }
  func.func @transform_1(%arg0: i32) -> (i32, i32) {
    %c0_i32 = arith.constant 0 : i32
    %c0_i32_0 = arith.constant 0 : i32
    %c0_i32_1 = arith.constant 0 : i32
    return %c0_i32, %c0_i32_0 : i32, i32
  }
  func.func @transform_2(%arg0: i32) -> (i32, i32) {
    %c0_i32 = arith.constant 0 : i32
    %c0_i32_0 = arith.constant 0 : i32
    %c0_i32_1 = arith.constant 0 : i32
    return %c0_i32, %c0_i32_0 : i32, i32
  }
  func.func @transform_3(%arg0: i32) -> (i32, i32) {
    %c0_i32 = arith.constant 0 : i32
    %c0_i32_0 = arith.constant 0 : i32
    %c0_i32_1 = arith.constant 0 : i32
    return %c0_i32, %c0_i32_0 : i32, i32
  }
  func.func @transform_4(%arg0: i32) -> (i32, i32) {
    %c0_i32 = arith.constant 0 : i32
    %c0_i32_0 = arith.constant 0 : i32
    %c0_i32_1 = arith.constant 0 : i32
    return %c0_i32, %c0_i32_0 : i32, i32
  }
  func.func @transform_5(%arg0: i32) -> (i32, i32) {
    %c0_i32 = arith.constant 0 : i32
    %c0_i32_0 = arith.constant 0 : i32
    %c0_i32_1 = arith.constant 0 : i32
    return %c0_i32, %c0_i32_0 : i32, i32
  }
  func.func @transform_6(%arg0: i32) -> (i32, i32) {
    %c0_i32 = arith.constant 0 : i32
    %c0_i32_0 = arith.constant 0 : i32
    %c0_i32_1 = arith.constant 0 : i32
    return %c0_i32, %c0_i32_0 : i32, i32
  }
  func.func @transform_7(%arg0: i32) -> (i32, i32) {
    %c0_i32 = arith.constant 0 : i32
    %c0_i32_0 = arith.constant 0 : i32
    %c0_i32_1 = arith.constant 0 : i32
    return %c0_i32, %c0_i32_0 : i32, i32
  }
}

</mosaic_0001>

<bundles_post_ra>
// kernel: tpu_custom_call.1
= control target key start
LH: loop header
LB: loop body
LE: loop exit
PB: predicated region body
PF: predicated region fallthrough
CT: control target
= control target key end

     0   :  { %13 = vsyncpa [#allocation3], 0  ;;  %vm31_vm0 = vcmask 261120   ;;  %s2230_s0 = inlined_call_operand.vmem [shape: f32[16,32], index: 0, kind: input, shape index: {}]   ;;  %s2231_s1 = inlined_call_operand.vmem [shape: bf16[32,96], index: 1, kind: input, shape index: {}]   ;;  %s2232_s2 = inlined_call_operand.vmem [shape: bf16[32,32], index: 2, kind: input, shape index: {}]   ;;  %s2233_s3 = inlined_call_operand.vmem [shape: bf16[32,128], index: 3, kind: input, shape index: {}]   ;;  %s2234_s4 = inlined_call_operand.vmem [shape: bf16[128,32], index: 4, kind: input, shape index: {}]   ;;  %s2235_s5 = inlined_call_operand.vmem [shape: f32[8,128], index: 5, kind: input, shape index: {}]   ;;  %s2236_s6 = inlined_call_operand.hbm [shape: f32[16,32], index: 6, kind: output, shape index: {0}]   ;;  %s2237_s7 = inlined_call_operand.hbm [shape: f32[16,32], index: 7, kind: output, shape index: {1}]  }
   0x1   :  { %v1880_v0 = vld [vmem:[%s2230_s0] sm:$0xff]  ;;  %v1885_v1 = vld [vmem:[%s2230_s0 + $0x8] sm:$0xff] }
   0x2   :  { %v32_v2 = vsel %vm31_vm0, %v1880_v0, 0.0  ;;  %v35_v3 = vsel %vm31_vm0, %v1885_v1, 0.0 }
   0x3   :  { %33 = vadd.xlane.f32.xlu0 %v32_v2 }
   0x7   :  { %36 = vadd.xlane.f32.xlu0 %v35_v3 }
   0x8   :  { %14 = vsyncpa [#allocation5], 0  ;;  %v1707_v14 = vld [vmem:[%s2231_s1] sm:$0xff]   ;;  %v1818_v15 = vmov 0.0   ;;  %v1708_v16 = vld [vmem:[%s2231_s1 + $0x8] sm:$0xff]   ;;  %vm1819_vm1 = vmmov 0   ;;  %v59_v21 = vlaneseq }
   0x9   :  { %1533 = vmatprep.subr.bf16.mxu0 %v1818_v15  ;;  %1553 = vmatprep.subr.bf16.mxu1 %v1818_v15  ;;  %v1915_v26 = vld [vmem:[%s2235_s5] sm:$0xff]  ;;  %s1820_s9 = smov 96   ;;  %vm137_vm2 = vcmask 64512   ;;  %s1821_s10 = smov 64   ;;  %vm262_vm3 = vcmask 1043456   ;;  %vm1040_vm4 = vcmask 130048  }
   0xa   :  { %1534 = vmatpush3.bf16.msra.mxu0 %v1707_v14  ;;  %1537 = vmatprep.mubr.msk.bf16.mxu0 %vm1819_vm1, %v1818_v15  ;;  %v1909_v24 = vshrl.u32 %v59_v21, 7  ;;  %s1822_s11 = smov 88   ;;  %s1823_s12 = smov 120   ;;  %vm1043_vm5 = vcmask 195584  }
   0xb   :  { %1535 = vmatprep.subr.bf16.mxu0 %v1818_v15  ;;  %1555 = vmatprep.mubr.msk.bf16.mxu1 %vm1819_vm1, %v1818_v15  ;;  %s1824_s13 = smov 56   ;;  %s1825_s14 = smov 80  }
   0xc   :  { %v61_v25 = vsub.s32 0, %v1909_v24  ;;  %v67_v30 = vsub.s32 1, %v1909_v24  ;;  %s1826_s15 = smov 112   ;;  %s1827_s16 = smov 48  }
   0xd   :  { %s1828_s17 = smov 72   ;;  %s1829_s18 = smov 104  }
   0xe   :  { %1536 = vmatpush3.bf16.msra.mxu0 %v1708_v16  ;;  %v62_v29 = vrot.slane %v1915_v26, %v61_v25  ;;  %v68_v34 = vrot.slane %v1915_v26, %v67_v30  ;;  %s1830_s19 = smov 40   ;;  %s1831_s20 = smov 8  }
   0xf   :  { %1541 = vmatprep.subr.bf16.mxu0 %v1818_v15  ;;  %s1832_s21 = smov 16   ;;  %s1833_s26 = smov 24  }
  0x90   :  { %v34_v4 = vpop.xlane.xlu0 %33 }
  0x91   :  { %v39_v5 = vmul.f32 0.03125, %v34_v4 }
  0x93   :  { %v41_v6 = vsub.f32 %v1880_v0, %v39_v5 }
  0x94   :  { %v37_v7 = vpop.xlane.xlu0 %36 }
  0x95   :  { %v40_v8 = vmul.f32 0.03125, %v37_v7  ;;  %v43_v9 = vmul.f32 %v41_v6, %v41_v6 }
  0x97   :  { %v42_v10 = vsub.f32 %v1885_v1, %v40_v8  ;;  %v45_v11 = vsel %vm31_vm0, %v43_v9, 0.0 }
  0x98   :  { %46 = vadd.xlane.f32.xlu1 %v45_v11 }
  0x99   :  { %v44_v12 = vmul.f32 %v42_v10, %v42_v10 }
  0x9b   :  { %v48_v13 = vsel %vm31_vm0, %v44_v12, 0.0 }
  0x9c   :  { %49 = vadd.xlane.f32.xlu1 %v48_v13 }
 0x125   :  { %v47_v17 = vpop.xlane.xlu1 %46 }
 0x126   :  { %v51_v18 = vmul.f32 0.03125, %v47_v17 }
 0x128   :  { %v53_v19 = vadd.f32 1e-05, %v51_v18 }
 0x129   :  { %v50_v20 = vpop.xlane.xlu1 %49 }
 0x12a   :  { %1721 = vrsqrt.f32 %v53_v19  ;;  %v52_v22 = vmul.f32 0.03125, %v50_v20 }
 0x12c   :  { %v54_v23 = vadd.f32 1e-05, %v52_v22 }
 0x12e   :  { %1723 = vrsqrt.f32 %v54_v23 }
 0x134   :  { %v1722_v27 = vpop.eup %1721 }
 0x135   :  { %v57_v28 = vmul.f32 %v1722_v27, %v41_v6 }
 0x137   :  { %v63_v33 = vmul.f32 %v62_v29, %v57_v28 }
 0x138   :  { %v1724_v31 = vpop.eup %1723 }
 0x139   :  { %v58_v32 = vmul.f32 %v1724_v31, %v42_v10  ;;  %v69_v36 = vadd.f32 %v68_v34, %v63_v33 }
 0x13b   :  { %v64_v35 = vmul.f32 %v62_v29, %v58_v32 }
 0x13d   :  { %v70_v37 = vadd.f32 %v68_v34, %v64_v35 }
 0x13f   :  { %v71_v38 = vpack.c.bf16 %v70_v37, %v69_v36 }
 0x141   :  { %1538 = vmatmul.mubr.msk.bf16.vlgmr.msra.gmra.mrb[0].mxu0 %vm31_vm0, %v71_v38 }
 0x142   :  { %1543 = vmatprep.mubr.msk.bf16.mxu0 %vm1819_vm1, %v1818_v15 }
 0x214   :  { %v125_v39 = vpop.f32.mrb[0].mxu0 }
 0x215   :  { %v1923_v40 = vpack.c.bf16 %v125_v39, %v125_v39  ;;  %v1539_v41 = vpop.f32.mrb[1].mxu0 }
 0x216   :  { %v128_v42 = vpop.f32.mrb[2].mxu0 }
 0x217   :  { %v1925_v43 = vpack.c.bf16 %v128_v42, %v128_v42  ;;  %135 = vrot.lane.b32.xlu0 %v1923_v40, %s1820_s9  ;;  %v1540_v44 = vpop.f32.mrb[3].mxu0 }
 0x219   :  { %185 = vrot.lane.b32.xlu1 %v1925_v43, %s1820_s9 }
 0x289   :  { %v136_v45 = vpop.permute.xlu0 %135 }
 0x28a   :  { %v142_v46 = vsel %vm137_vm2, %v136_v45, 0 }
 0x28b   :  { %1542 = vmatpush3.bf16.xpose.msra.mxu0 %v142_v46  ;;  %v186_v47 = vpop.permute.xlu1 %185 }
 0x28c   :  { %1547 = vmatprep.subr.bf16.mxu0 %v1818_v15  ;;  %v191_v48 = vsel %vm137_vm2, %v186_v47, 0 }
 0x292   :  { %1544 = vmatmul.mubr.msk.bf16.vlgmr.msra.gmra.mrb[4].mxu0 %vm137_vm2, %v1923_v40 }
 0x293   :  { %1548 = vmatpush3.bf16.xpose.msra.mxu0 %v191_v48  ;;  %1549 = vmatprep.mubr.msk.bf16.mxu0 %vm1819_vm1, %v1818_v15 }
 0x294   :  { %1559 = vmatprep.subr.bf16.mxu0 %v1818_v15 }
 0x29a   :  { %1550 = vmatmul.mubr.msk.bf16.vlgmr.msra.gmra.mrb[8].mxu0 %vm137_vm2, %v1925_v43 }
 0x29b   :  { %1561 = vmatprep.mubr.msk.bf16.mxu0 %vm1819_vm1, %v1818_v15 }
 0x365   :  { %v178_v49 = vpop.f32.mrb[4].mxu0 }
 0x366   :  { %v1545_v50 = vpop.f32.mrb[5].mxu0  ;;  %v233_v51 = vsel %vm137_vm2, %v178_v49, -inf }
 0x367   :  { %234 = vmax.xlane.f32.xlu1 %v233_v51  ;;  %v181_v52 = vpop.f32.mrb[6].mxu0 }
 0x368   :  { %v1546_v53 = vpop.f32.mrb[7].mxu0 }
 0x36d   :  { %v227_v54 = vpop.f32.mrb[8].mxu0 }
 0x36e   :  { %v1551_v55 = vpop.f32.mrb[9].mxu0  ;;  %v236_v56 = vsel %vm137_vm2, %v227_v54, -inf }
 0x36f   :  { %237 = vmax.xlane.f32.xlu0 %v236_v56  ;;  %v230_v57 = vpop.f32.mrb[10].mxu0 }
 0x370   :  { %v1552_v58 = vpop.f32.mrb[11].mxu0 }
 0x378   :  { %306 = vrot.lane.b32.xlu1 %v1925_v43, %s1821_s10 }
 0x37c   :  { %356 = vrot.lane.b32.xlu1 %v1923_v40, %s1822_s11 }
 0x3f4   :  { %v235_v59 = vpop.xlane.xlu1 %234 }
 0x3f5   :  { %v239_v60 = vsub.f32 %v178_v49, %v235_v59 }
 0x3f7   :  { %v241_v61 = vmul.f32 1.442695, %v239_v60 }
 0x3f8   :  { %v307_v62 = vpop.permute.xlu1 %306 }
 0x3f9   :  { %1725 = vpow2.f32 %v241_v61  ;;  %v312_v63 = vsel %vm262_vm3, %v307_v62, 0 }
 0x3fa   :  { %1560 = vmatpush3.bf16.msra.mxu0 %v312_v63 }
 0x3fb   :  { %1571 = vmatprep.subr.bf16.mxu0 %v1818_v15 }
 0x3fc   :  { %v238_v2 = vpop.xlane.xlu0 %237  ;;  %v357_v10 = vpop.permute.xlu1 %356 }
 0x3fd   :  { %v240_v3 = vsub.f32 %v227_v54, %v238_v2  ;;  %v362_v18 = vsel %vm137_vm2, %v357_v10, 0 }
 0x3ff   :  { %v243_v4 = vmul.f32 1.442695, %v240_v3 }
 0x401   :  { %1727 = vpow2.f32 %v243_v4 }
 0x403   :  { %v1726_v5 = vpop.eup %1725 }
 0x404   :  { %v245_v6 = vsel %vm137_vm2, %v1726_v5, 0.0 }
 0x405   :  { %246 = vadd.xlane.f32.xlu0 %v245_v6 }
 0x40b   :  { %v1728_v7 = vpop.eup %1727 }
 0x40c   :  { %v248_v8 = vsel %vm137_vm2, %v1728_v7, 0.0 }
 0x40d   :  { %249 = vadd.xlane.f32.xlu1 %v248_v8 }
 0x41b   :  { %257 = vrot.lane.b32.xlu0 %v1923_v40, %s1821_s10 }
 0x41e   :  { %406 = vrot.lane.b32.xlu1 %v1925_v43, %s1822_s11 }
 0x41f   :  { %354 = vrot.lane.b32.xlu0 %v1923_v40, %s1823_s12 }
 0x422   :  { %404 = vrot.lane.b32.xlu1 %v1925_v43, %s1823_s12 }
 0x492   :  { %v247_v9 = vpop.xlane.xlu0 %246 }
 0x493   :  { %1729 = vrcp.f32 %v247_v9 }
 0x496   :  { %v258_v11 = vpop.permute.xlu0 %257 }
 0x497   :  { %v264_v12 = vsel %vm262_vm3, %v258_v11, 0 }
 0x498   :  { %1554 = vmatpush3.bf16.msra.mxu1 %v264_v12 }
 0x499   :  { %1565 = vmatprep.subr.bf16.mxu1 %v1818_v15 }
 0x49a   :  { %v250_v13 = vpop.xlane.xlu1 %249  ;;  %v355_v23 = vpop.permute.xlu0 %354 }
 0x49b   :  { %1731 = vrcp.f32 %v250_v13 }
 0x49d   :  { %v1730_v14 = vpop.eup %1729 }
 0x49e   :  { %v1955_v16 = vmul.f32 %v1730_v14, %v1726_v5  ;;  %v407_v21 = vpop.permute.xlu1 %406 }
 0x49f   :  { %v412_v25 = vsel %vm137_vm2, %v407_v21, 0 }
 0x4a0   :  { %v255_v17 = vpack.c.bf16 %v1955_v16, %v1955_v16 }
 0x4a2   :  { %1556 = vmatmul.mubr.msk.bf16.vlgmr.msra.gmra.mrb[0].mxu1 %vm137_vm2, %v255_v17  ;;  %v405_v27 = vpop.permute.xlu1 %404 }
 0x4a3   :  { %1566 = vmatpush3.bf16.xpose.msra.mxu1 %v362_v18  ;;  %1567 = vmatprep.mubr.msk.bf16.mxu1 %vm1819_vm1, %v1818_v15 }
 0x4a4   :  { %1577 = vmatprep.subr.bf16.mxu1 %v1818_v15 }
 0x4a5   :  { %v1732_v19 = vpop.eup %1731 }
 0x4a6   :  { %v1964_v20 = vmul.f32 %v1732_v19, %v1728_v7 }
 0x4a8   :  { %v256_v22 = vpack.c.bf16 %v1964_v20, %v1964_v20 }
 0x4aa   :  { %1562 = vmatmul.mubr.msk.bf16.vlgmr.msra.gmra.mrb[12].mxu0 %vm137_vm2, %v256_v22  ;;  %1568 = vmatmul.mubr.msk.bf16.vlgmr.msra.gmra.mrb[4].mxu1 %vm137_vm2, %v355_v23 }
 0x4ab   :  { %1572 = vmatpush3.bf16.xpose.msra.mxu0 %v412_v25  ;;  %1573 = vmatprep.mubr.msk.bf16.mxu0 %vm1819_vm1, %v1818_v15 }
 0x4ac   :  { %1583 = vmatprep.subr.bf16.mxu0 %v1818_v15  ;;  %1579 = vmatprep.mubr.msk.bf16.mxu1 %vm1819_vm1, %v1818_v15 }
 0x4b2   :  { %1574 = vmatmul.mubr.msk.bf16.vlgmr.msra.gmra.mrb[16].mxu0 %vm137_vm2, %v405_v27 }
 0x4b3   :  { %1585 = vmatprep.mubr.msk.bf16.mxu0 %vm1819_vm1, %v1818_v15 }
 0x575   :  { %v1979_v28 = vpop.f32.mrb[0].mxu1 }
 0x576   :  { %v1557_v29 = vpop.f32.mrb[1].mxu1 }
 0x577   :  { %v303_v30 = vpop.f32.mrb[2].mxu1 }
 0x578   :  { %v1558_v31 = vpop.f32.mrb[3].mxu1 }
 0x57d   :  { %v1981_v32 = vpop.f32.mrb[12].mxu0  ;;  %v398_v33 = vpop.f32.mrb[4].mxu1 }
 0x57e   :  { %v1563_v34 = vpop.f32.mrb[13].mxu0  ;;  %v1569_v35 = vpop.f32.mrb[5].mxu1  ;;  %v454_v36 = vsel %vm137_vm2, %v398_v33, -inf }
 0x57f   :  { %455 = vmax.xlane.f32.xlu0 %v454_v36  ;;  %v351_v37 = vpop.f32.mrb[14].mxu0  ;;  %v401_v38 = vpop.f32.mrb[6].mxu1 }
 0x580   :  { %v1564_v39 = vpop.f32.mrb[15].mxu0  ;;  %v1570_v41 = vpop.f32.mrb[7].mxu1 }
 0x585   :  { %v448_v42 = vpop.f32.mrb[16].mxu0 }
 0x586   :  { %v1575_v44 = vpop.f32.mrb[17].mxu0  ;;  %v457_v45 = vsel %vm137_vm2, %v448_v42, -inf }
 0x587   :  { %458 = vmax.xlane.f32.xlu1 %v457_v45  ;;  %v451_v46 = vpop.f32.mrb[18].mxu0 }
 0x588   :  { %v1576_v47 = vpop.f32.mrb[19].mxu0 }
 0x598   :  { %526 = vrot.lane.b32.xlu1 %v1925_v43, %s1824_s13 }
 0x59c   :  { %576 = vrot.lane.b32.xlu1 %v1923_v40, %s1825_s14 }
 0x5a0   :  { %626 = vrot.lane.b32.xlu1 %v1925_v43, %s1825_s14 }
 0x5a4   :  { %624 = vrot.lane.b32.xlu1 %v1925_v43, %s1826_s15 }
 0x60c   :  { %v456_v48 = vpop.xlane.xlu0 %455 }
 0x60d   :  { %v460_v49 = vsub.f32 %v398_v33, %v456_v48 }
 0x60f   :  { %v462_v50 = vmul.f32 1.442695, %v460_v49 }
 0x611   :  { %1733 = vpow2.f32 %v462_v50 }
 0x614   :  { %v459_v51 = vpop.xlane.xlu1 %458 }
 0x615   :  { %v461_v52 = vsub.f32 %v448_v42, %v459_v51 }
 0x617   :  { %v464_v53 = vmul.f32 1.442695, %v461_v52 }
 0x618   :  { %v527_v54 = vpop.permute.xlu1 %526 }
 0x619   :  { %1735 = vpow2.f32 %v464_v53  ;;  %v532_v55 = vsel %vm262_vm3, %v527_v54, 0 }
 0x61a   :  { %1584 = vmatpush3.bf16.msra.mxu0 %v532_v55 }
 0x61b   :  { %v1734_v56 = vpop.eup %1733  ;;  %1595 = vmatprep.subr.bf16.mxu0 %v1818_v15 }
 0x61c   :  { %v466_v57 = vsel %vm137_vm2, %v1734_v56, 0.0  ;;  %v577_v5 = vpop.permute.xlu1 %576 }
 0x61d   :  { %467 = vadd.xlane.f32.xlu0 %v466_v57  ;;  %v582_v9 = vsel %vm137_vm2, %v577_v5, 0 }
 0x620   :  { %v627_v8 = vpop.permute.xlu1 %626 }
 0x621   :  { %v632_v11 = vsel %vm137_vm2, %v627_v8, 0 }
 0x623   :  { %v1736_v58 = vpop.eup %1735 }
 0x624   :  { %v469_v59 = vsel %vm137_vm2, %v1736_v58, 0.0  ;;  %v625_v13 = vpop.permute.xlu1 %624 }
 0x625   :  { %470 = vadd.xlane.f32.xlu0 %v469_v59 }
 0x63b   :  { %478 = vrot.lane.b32.xlu0 %v1923_v40, %s1824_s13 }
 0x63f   :  { %574 = vrot.lane.b32.xlu0 %v1923_v40, %s1826_s15 }
 0x6aa   :  { %v468_v60 = vpop.xlane.xlu0 %467 }
 0x6ab   :  { %1737 = vrcp.f32 %v468_v60 }
 0x6b2   :  { %v471_v61 = vpop.xlane.xlu0 %470 }
 0x6b3   :  { %1739 = vrcp.f32 %v471_v61 }
 0x6b5   :  { %v1738_v62 = vpop.eup %1737 }
 0x6b6   :  { %v1995_v63 = vmul.f32 %v1738_v62, %v1734_v56  ;;  %v479_v2 = vpop.permute.xlu0 %478 }
 0x6b7   :  { %v484_v3 = vsel %vm262_vm3, %v479_v2, 0 }
 0x6b8   :  { %1578 = vmatpush3.bf16.msra.mxu1 %v484_v3  ;;  %v476_v4 = vpack.c.bf16 %v1995_v63, %v1995_v63 }
 0x6b9   :  { %1589 = vmatprep.subr.bf16.mxu1 %v1818_v15 }
 0x6ba   :  { %v575_v12 = vpop.permute.xlu0 %574 }
 0x6bb   :  { %1580 = vmatmul.mubr.msk.bf16.vlgmr.msra.gmra.mrb[8].mxu1 %vm137_vm2, %v476_v4 }
 0x6bc   :  { %1591 = vmatprep.mubr.msk.bf16.mxu1 %vm1819_vm1, %v1818_v15 }
 0x6bd   :  { %v1740_v6 = vpop.eup %1739 }
 0x6be   :  { %v2004_v7 = vmul.f32 %v1740_v6, %v1736_v58 }
 0x6c0   :  { %v477_v10 = vpack.c.bf16 %v2004_v7, %v2004_v7 }
 0x6c1   :  { %1590 = vmatpush3.bf16.xpose.msra.mxu1 %v582_v9 }
 0x6c2   :  { %1586 = vmatmul.mubr.msk.bf16.vlgmr.msra.gmra.mrb[20].mxu0 %vm137_vm2, %v477_v10  ;;  %1601 = vmatprep.subr.bf16.mxu1 %v1818_v15 }
 0x6c3   :  { %1596 = vmatpush3.bf16.xpose.msra.mxu0 %v632_v11  ;;  %1597 = vmatprep.mubr.msk.bf16.mxu0 %vm1819_vm1, %v1818_v15 }
 0x6c4   :  { %1607 = vmatprep.subr.bf16.mxu0 %v1818_v15 }
 0x6c8   :  { %1592 = vmatmul.mubr.msk.bf16.vlgmr.msra.gmra.mrb[12].mxu1 %vm137_vm2, %v575_v12 }
 0x6c9   :  { %1603 = vmatprep.mubr.msk.bf16.mxu1 %vm1819_vm1, %v1818_v15 }
 0x6ca   :  { %1598 = vmatmul.mubr.msk.bf16.vlgmr.msra.gmra.mrb[24].mxu0 %vm137_vm2, %v625_v13 }
 0x6cb   :  { %1609 = vmatprep.mubr.msk.bf16.mxu0 %vm1819_vm1, %v1818_v15 }
 0x78e   :  { %v2021_v14 = vpop.f32.mrb[8].mxu1 }
 0x78f   :  { %v1581_v17 = vpop.f32.mrb[9].mxu1 }
 0x790   :  { %v523_v18 = vpop.f32.mrb[10].mxu1 }
 0x791   :  { %v1582_v19 = vpop.f32.mrb[11].mxu1 }
 0x795   :  { %v2023_v21 = vpop.f32.mrb[20].mxu0 }
 0x796   :  { %v1692_v22 = vpack.i.bf16 %v2023_v21, %v2021_v14  ;;  %v1587_v23 = vpop.f32.mrb[21].mxu0 }
 0x797   :  { %v571_v25 = vpop.f32.mrb[22].mxu0 }
 0x798   :  { %v1588_v27 = vpop.f32.mrb[23].mxu0 }
 0x79b   :  { %v618_v29 = vpop.f32.mrb[12].mxu1 }
 0x79c   :  { %v1593_v30 = vpop.f32.mrb[13].mxu1  ;;  %v674_v31 = vsel %vm137_vm2, %v618_v29, -inf }
 0x79d   :  { %675 = vmax.xlane.f32.xlu0 %v674_v31  ;;  %v621_v33 = vpop.f32.mrb[14].mxu1  ;;  %v668_v34 = vpop.f32.mrb[24].mxu0 }
 0x79e   :  { %v1594_v35 = vpop.f32.mrb[15].mxu1  ;;  %v1599_v36 = vpop.f32.mrb[25].mxu0  ;;  %v677_v37 = vsel %vm137_vm2, %v668_v34, -inf }
 0x79f   :  { %678 = vmax.xlane.f32.xlu1 %v677_v37  ;;  %v671_v38 = vpop.f32.mrb[26].mxu0 }
 0x7a0   :  { %v1600_v39 = vpop.f32.mrb[27].mxu0 }
 0x7b0   :  { %746 = vrot.lane.b32.xlu1 %v1925_v43, %s1827_s16 }
 0x7b4   :  { %796 = vrot.lane.b32.xlu1 %v1923_v40, %s1828_s17 }
 0x7b8   :  { %846 = vrot.lane.b32.xlu1 %v1925_v43, %s1828_s17 }
 0x7bc   :  { %844 = vrot.lane.b32.xlu1 %v1925_v43, %s1829_s18 }
 0x82a   :  { %v676_v41 = vpop.xlane.xlu0 %675 }
 0x82b   :  { %v680_v42 = vsub.f32 %v618_v29, %v676_v41 }
 0x82c   :  { %v679_v44 = vpop.xlane.xlu1 %678 }
 0x82d   :  { %v682_v45 = vmul.f32 1.442695, %v680_v42  ;;  %v681_v46 = vsub.f32 %v668_v34, %v679_v44 }
 0x82f   :  { %1741 = vpow2.f32 %v682_v45  ;;  %v684_v47 = vmul.f32 1.442695, %v681_v46 }
 0x830   :  { %v747_v48 = vpop.permute.xlu1 %746 }
 0x831   :  { %1743 = vpow2.f32 %v684_v47  ;;  %v752_v49 = vsel %vm262_vm3, %v747_v48, 0 }
 0x832   :  { %1608 = vmatpush3.bf16.msra.mxu0 %v752_v49 }
 0x833   :  { %1619 = vmatprep.subr.bf16.mxu0 %v1818_v15 }
 0x834   :  { %v797_v59 = vpop.permute.xlu1 %796 }
 0x835   :  { %v802_v4 = vsel %vm137_vm2, %v797_v59, 0  ;;  %v1710_v59 = vld [vmem:[%s2232_s2 + $0x8] sm:$0xff]  }
 0x838   :  { %v847_v3 = vpop.permute.xlu1 %846 }
 0x839   :  { %v1742_v50 = vpop.eup %1741  ;;  %v852_v6 = vsel %vm137_vm2, %v847_v3, 0 }
 0x83a   :  { %v686_v51 = vsel %vm137_vm2, %v1742_v50, 0.0 }
 0x83b   :  { %v1744_v52 = vpop.eup %1743  ;;  %687 = vadd.xlane.f32.xlu0 %v686_v51 }
 0x83c   :  { %v689_v53 = vsel %vm137_vm2, %v1744_v52, 0.0  ;;  %v845_v9 = vpop.permute.xlu1 %844 }
 0x83f   :  { %690 = vadd.xlane.f32.xlu0 %v689_v53 }
 0x855   :  { %698 = vrot.lane.b32.xlu0 %v1923_v40, %s1827_s16 }
 0x859   :  { %794 = vrot.lane.b32.xlu0 %v1923_v40, %s1829_s18 }
 0x8c8   :  { %v688_v54 = vpop.xlane.xlu0 %687 }
 0x8c9   :  { %1745 = vrcp.f32 %v688_v54 }
 0x8cc   :  { %v691_v55 = vpop.xlane.xlu0 %690 }
 0x8cd   :  { %1747 = vrcp.f32 %v691_v55 }
 0x8d0   :  { %v699_v56 = vpop.permute.xlu0 %698 }
 0x8d1   :  { %v704_v57 = vsel %vm262_vm3, %v699_v56, 0 }
 0x8d2   :  { %1602 = vmatpush3.bf16.msra.mxu1 %v704_v57 }
 0x8d3   :  { %v1746_v58 = vpop.eup %1745  ;;  %1613 = vmatprep.subr.bf16.mxu1 %v1818_v15 }
 0x8d4   :  { %v2041_v60 = vmul.f32 %v1746_v58, %v1742_v50  ;;  %v795_v8 = vpop.permute.xlu0 %794  ;;  %v1709_v58 = vld [vmem:[%s2232_s2] sm:$0xff]  }
 0x8d6   :  { %v696_v61 = vpack.c.bf16 %v2041_v60, %v2041_v60 }
 0x8d7   :  { %v1748_v62 = vpop.eup %1747 }
 0x8d8   :  { %v2045_v2 = vmul.f32 %v1748_v62, %v1744_v52  ;;  %1604 = vmatmul.mubr.msk.bf16.vlgmr.msra.gmra.mrb[16].mxu1 %vm137_vm2, %v696_v61 }
 0x8d9   :  { %1615 = vmatprep.mubr.msk.bf16.mxu1 %vm1819_vm1, %v1818_v15 }
 0x8da   :  { %v697_v5 = vpack.c.bf16 %v2045_v2, %v2045_v2 }
 0x8db   :  { %1614 = vmatpush3.bf16.xpose.msra.mxu1 %v802_v4 }
 0x8dc   :  { %1610 = vmatmul.mubr.msk.bf16.vlgmr.msra.gmra.mrb[28].mxu0 %vm137_vm2, %v697_v5  ;;  %1625 = vmatprep.subr.bf16.mxu1 %v1818_v15 }
 0x8dd   :  { %1620 = vmatpush3.bf16.xpose.msra.mxu0 %v852_v6  ;;  %1621 = vmatprep.mubr.msk.bf16.mxu0 %vm1819_vm1, %v1818_v15 }
 0x8de   :  { %1631 = vmatprep.subr.bf16.mxu0 %v1818_v15 }
 0x8e2   :  { %1616 = vmatmul.mubr.msk.bf16.vlgmr.msra.gmra.mrb[20].mxu1 %vm137_vm2, %v795_v8 }
 0x8e3   :  { %1627 = vmatprep.mubr.msk.bf16.mxu1 %vm1819_vm1, %v1818_v15 }
 0x8e4   :  { %1622 = vmatmul.mubr.msk.bf16.vlgmr.msra.gmra.mrb[32].mxu0 %vm137_vm2, %v845_v9 }
 0x8e5   :  { %1633 = vmatprep.mubr.msk.bf16.mxu0 %vm1819_vm1, %v1818_v15 }
 0x9ab   :  { %v740_v10 = vpop.f32.mrb[16].mxu1 }
 0x9ac   :  { %v1605_v11 = vpop.f32.mrb[17].mxu1 }
 0x9ad   :  { %v743_v12 = vpop.f32.mrb[18].mxu1 }
 0x9ae   :  { %v1606_v13 = vpop.f32.mrb[19].mxu1 }
 0x9af   :  { %v788_v17 = vpop.f32.mrb[28].mxu0 }
 0x9b0   :  { %v1697_v18 = vpack.i.bf16 %v788_v17, %v740_v10  ;;  %v1611_v19 = vpop.f32.mrb[29].mxu0 }
 0x9b1   :  { %v791_v23 = vpop.f32.mrb[30].mxu0 }
 0x9b2   :  { %v1612_v25 = vpop.f32.mrb[31].mxu0 }
 0x9b5   :  { %v838_v27 = vpop.f32.mrb[20].mxu1 }
 0x9b6   :  { %v1617_v29 = vpop.f32.mrb[21].mxu1  ;;  %v894_v30 = vsel %vm137_vm2, %v838_v27, -inf }
 0x9b7   :  { %895 = vmax.xlane.f32.xlu0 %v894_v30  ;;  %v841_v31 = vpop.f32.mrb[22].mxu1  ;;  %v888_v33 = vpop.f32.mrb[32].mxu0 }
 0x9b8   :  { %v1618_v34 = vpop.f32.mrb[23].mxu1  ;;  %v1623_v35 = vpop.f32.mrb[33].mxu0  ;;  %v897_v36 = vsel %vm137_vm2, %v888_v33, -inf }
 0x9b9   :  { %898 = vmax.xlane.f32.xlu1 %v897_v36  ;;  %v891_v37 = vpop.f32.mrb[34].mxu0 }
 0x9ba   :  { %v1624_v38 = vpop.f32.mrb[35].mxu0 }
 0x9ca   :  { %966 = vrot.lane.b32.xlu1 %v1925_v43, %s1830_s19 }
 0x9ce   :  { %1693 = vrot.lane.b32.xlu1 %v1692_v22, %s1831_s20 }
 0x9d2   :  { %1698 = vrot.lane.b32.xlu1 %v1697_v18, %s1832_s21 }
 0xa44   :  { %v896_v39 = vpop.xlane.xlu0 %895 }
 0xa45   :  { %v900_v41 = vsub.f32 %v838_v27, %v896_v39 }
 0xa46   :  { %v899_v42 = vpop.xlane.xlu1 %898 }
 0xa47   :  { %v902_v44 = vmul.f32 1.442695, %v900_v41  ;;  %v901_v45 = vsub.f32 %v888_v33, %v899_v42 }
 0xa49   :  { %1749 = vpow2.f32 %v902_v44  ;;  %v904_v46 = vmul.f32 1.442695, %v901_v45 }
 0xa4a   :  { %v967_v47 = vpop.permute.xlu1 %966 }
 0xa4b   :  { %1751 = vpow2.f32 %v904_v46  ;;  %v972_v43 = vsel %vm262_vm3, %v967_v47, 0 }
 0xa4c   :  { %1632 = vmatpush3.bf16.msra.mxu0 %v972_v43 }
 0xa4d   :  { %1645 = vmatprep.subr.bf16.mxu0 %v1818_v15 }
 0xa4e   :  { %v1694_v11 = vpop.permute.xlu1 %1693 }
 0xa4f   :  { %v1696_v13 = vunpack.i.h.bf16 %v1694_v11  ;;  %v1695_v17 = vunpack.i.l.bf16 %v1694_v11 }
 0xa51   :  { %v1073_v25 = vsel %vm137_vm2, %v1981_v32, %v1696_v13  ;;  %v1072_v27 = vsel %vm137_vm2, %v1979_v28, %v1695_v17  ;;  %v1085_v32 = vsub.s32 2, %v1909_v24  ;;  %v1179_v13 = vsub.s32 4, %v1909_v24 }
 0xa52   :  { %v1699_v12 = vpop.permute.xlu1 %1698 }
 0xa53   :  { %v1750_v48 = vpop.eup %1749  ;;  %v1701_v18 = vunpack.i.h.bf16 %v1699_v12  ;;  %v1700_v19 = vunpack.i.l.bf16 %v1699_v12  ;;  %v1086_v28 = vrot.slane %v1915_v26, %v1085_v32  ;;  %v1719_v32 = vld [vmem:[%s2234_s4 + $0x30] sm:$0xff]  }
 0xa54   :  { %v906_v14 = vsel %vm137_vm2, %v1750_v48, 0.0 }
 0xa55   :  { %v1752_v21 = vpop.eup %1751  ;;  %907 = vadd.xlane.f32.xlu0 %v906_v14  ;;  %v1074_v31 = vsel %vm1040_vm4, %v1072_v27, %v1700_v19  ;;  %v1075_v33 = vsel %vm1040_vm4, %v1073_v25, %v1701_v18 }
 0xa56   :  { %v909_v22 = vsel %vm137_vm2, %v1752_v21, 0.0 }
 0xa59   :  { %910 = vadd.xlane.f32.xlu0 %v909_v22 }
 0xa6f   :  { %918 = vrot.lane.b32.xlu0 %v1923_v40, %s1830_s19 }
 0xae2   :  { %v908_v49 = vpop.xlane.xlu0 %907 }
 0xae3   :  { %1753 = vrcp.f32 %v908_v49 }
 0xae6   :  { %v911_v50 = vpop.xlane.xlu0 %910 }
 0xae7   :  { %1755 = vrcp.f32 %v911_v50 }
 0xaea   :  { %v919_v51 = vpop.permute.xlu0 %918 }
 0xaeb   :  { %v924_v52 = vsel %vm262_vm3, %v919_v51, 0 }
 0xaec   :  { %1626 = vmatpush3.bf16.msra.mxu1 %v924_v52 }
 0xaed   :  { %v1754_v53 = vpop.eup %1753  ;;  %1637 = vmatprep.subr.bf16.mxu1 %v1818_v15 }
 0xaee   :  { %v913_v54 = vmul.f32 %v1754_v53, %v1750_v48 }
 0xaf0   :  { %v916_v55 = vpack.c.bf16 %v913_v54, %v913_v54 }
 0xaf1   :  { %v1756_v56 = vpop.eup %1755 }
 0xaf2   :  { %v2080_v57 = vmul.f32 %v1756_v56, %v1752_v21  ;;  %1628 = vmatmul.mubr.msk.bf16.vlgmr.msra.gmra.mrb[24].mxu1 %vm137_vm2, %v916_v55 }
 0xaf3   :  { %1641 = vmatprep.mubr.msk.bf16.mxu1 %vm1819_vm1, %v1818_v15  ;;  %1638 = vmatpush3.bf16.msra.mxu1 %v1709_v58 }
 0xaf4   :  { %v917_v40 = vpack.c.bf16 %v2080_v57, %v2080_v57  ;;  %1639 = vmatprep.subr.bf16.mxu1 %v1818_v15 }
 0xaf6   :  { %1634 = vmatmul.mubr.msk.bf16.vlgmr.msra.gmra.mrb[36].mxu0 %vm137_vm2, %v917_v40  ;;  %v1711_v40 = vld [vmem:[%s2233_s3] sm:$0xff]  }
 0xaf7   :  { %1649 = vmatprep.mubr.msk.bf16.mxu0 %vm1819_vm1, %v1818_v15  ;;  %1640 = vmatpush3.bf16.msra.mxu1 %v1710_v59 }
 0xaf8   :  { %1653 = vmatprep.subr.bf16.mxu1 %v1818_v15  ;;  %1646 = vmatpush3.bf16.msra.mxu0 %v1711_v40 }
 0xaf9   :  { %1647 = vmatprep.subr.bf16.mxu0 %v1818_v15 }
 0xbc5   :  { %v960_v61 = vpop.f32.mrb[24].mxu1 }
 0xbc6   :  { %v1629_v62 = vpop.f32.mrb[25].mxu1 }
 0xbc7   :  { %v963_v3 = vpop.f32.mrb[26].mxu1 }
 0xbc8   :  { %v1630_v4 = vpop.f32.mrb[27].mxu1 }
 0xbc9   :  { %v1008_v5 = vpop.f32.mrb[36].mxu0 }
 0xbca   :  { %v1702_v6 = vpack.i.bf16 %v1008_v5, %v960_v61  ;;  %v1635_v8 = vpop.f32.mrb[37].mxu0  ;;  %v1173_v5 = vsub.s32 3, %v1909_v24 }
 0xbcb   :  { %v1011_v9 = vpop.f32.mrb[38].mxu0 }
 0xbcc   :  { %1703 = vrot.lane.b32.xlu0 %v1702_v6, %s1833_s26  ;;  %v1636_v10 = vpop.f32.mrb[39].mxu0  ;;  %v1174_v11 = vrot.slane %v1915_v26, %v1173_v5 }
 0xc3e   :  { %v1704_v23 = vpop.permute.xlu0 %1703 }
 0xc3f   :  { %v1706_v29 = vunpack.i.h.bf16 %v1704_v23  ;;  %v1705_v30 = vunpack.i.l.bf16 %v1704_v23 }
 0xc41   :  { %v1077_v34 = vsel %vm1043_vm5, %v1075_v33, %v1706_v29  ;;  %v1076_v35 = vsel %vm1043_vm5, %v1074_v31, %v1705_v30  ;;  %v1713_v30 = vld [vmem:[%s2234_s4] sm:$0xff]   ;;  %v1714_v31 = vld [vmem:[%s2234_s4 + $0x8] sm:$0xff]   ;;  %v1715_v33 = vld [vmem:[%s2234_s4 + $0x10] sm:$0xff]  }
 0xc42   :  { %v1078_v36 = vpack.c.bf16 %v1077_v34, %v1076_v35  ;;  %v1716_v34 = vld [vmem:[%s2234_s4 + $0x18] sm:$0xff]   ;;  %v1717_v35 = vld [vmem:[%s2234_s4 + $0x20] sm:$0xff]  }
 0xc44   :  { %1642 = vmatmul.mubr.msk.bf16.vlgmr.msra.gmra.mrb[28].mxu1 %vm31_vm0, %v1078_v36  ;;  %v1718_v36 = vld [vmem:[%s2234_s4 + $0x28] sm:$0xff]  }
 0xc45   :  { %1669 = vmatprep.mubr.msk.bf16.mxu1 %vm1819_vm1, %v1818_v15  ;;  %1654 = vmatpush3.bf16.msra.mxu1 %v1713_v30 }
 0xc46   :  { %1655 = vmatprep.subr.bf16.mxu1 %v1818_v15 }
 0xc49   :  { %1656 = vmatpush3.bf16.msra.mxu1 %v1714_v31 }
 0xc4a   :  { %1657 = vmatprep.subr.bf16.mxu1 %v1818_v15 }
 0xc4d   :  { %1658 = vmatpush3.bf16.msra.mxu1 %v1715_v33 }
 0xc4e   :  { %1659 = vmatprep.subr.bf16.mxu1 %v1818_v15 }
 0xc51   :  { %1660 = vmatpush3.bf16.msra.mxu1 %v1716_v34 }
 0xc52   :  { %1661 = vmatprep.subr.bf16.mxu1 %v1818_v15 }
 0xc55   :  { %1662 = vmatpush3.bf16.msra.mxu1 %v1717_v35 }
 0xc56   :  { %1663 = vmatprep.subr.bf16.mxu1 %v1818_v15 }
 0xc59   :  { %1664 = vmatpush3.bf16.msra.mxu1 %v1718_v36 }
 0xc5a   :  { %1665 = vmatprep.subr.bf16.mxu1 %v1818_v15 }
 0xc5d   :  { %1666 = vmatpush3.bf16.msra.mxu1 %v1719_v32 }
 0xc5e   :  { %1667 = vmatprep.subr.bf16.mxu1 %v1818_v15 }
 0xd17   :  { %v1136_v37 = vpop.f32.mrb[28].mxu1 }
 0xd18   :  { %v1137_v38 = vadd.f32 %v1136_v37, %v1086_v28  ;;  %v1643_v39 = vpop.f32.mrb[29].mxu1  ;;  %v1190_v37 = vsub.s32 5, %v1909_v24 }
 0xd19   :  { %v1139_v41 = vpop.f32.mrb[30].mxu1 }
 0xd1a   :  { %v2113_v42 = vadd.f32 %v1137_v38, %v1880_v0  ;;  %v1140_v44 = vadd.f32 %v1139_v41, %v1086_v28  ;;  %v1644_v45 = vpop.f32.mrb[31].mxu1  ;;  %v1720_v28 = vld [vmem:[%s2234_s4 + $0x38] sm:$0xff]   ;;  %v1191_v38 = vrot.slane %v1915_v26, %v1190_v37  ;;  %s1834_s4 = smov [#allocation4]  }
 0xd1b   :  { %1668 = vmatpush3.bf16.msra.mxu1 %v1720_v28 }
 0xd1c   :  { %v2116_v46 = vadd.f32 %v1140_v44, %v1885_v1  ;;  %v1145_v47 = vsel %vm31_vm0, %v2113_v42, 0.0 }
 0xd1d   :  { %1146 = vadd.xlane.f32.xlu1 %v1145_v47 }
 0xd1e   :  { %v1148_v43 = vsel %vm31_vm0, %v2116_v46, 0.0 }
 0xd1f   :  { %1149 = vadd.xlane.f32.xlu0 %v1148_v43 }
 0xd2e   :  { %1016 = vrot.lane.b32.xlu1 %v1995_v63, %s1831_s20 }
 0xd32   :  { %1024 = vrot.lane.b32.xlu1 %v2041_v60, %s1832_s21 }
 0xd36   :  { %1026 = vrot.lane.b32.xlu1 %v2045_v2, %s1832_s21  ;;  %s1433_s21 = sshll.u32 %s1834_s4, 4  ;;  %s1434_s21 = int_to_ptr.vmem [resolvable:$true] %s1433_s21 }
 0xd37   :  { %s1770_s22 = scalar_lea.vmem %s1434_s21, 256  ;;  %p1775_p1 = scmp.lt.s32.totalorder %s1434_s21, %s1434_s21 }
 0xd38   :  { %p1771_p0 = scmp.ne.s32.totalorder %s1434_s21, %s1770_s22  ;;  %p1776_p2 = scmp.lt.s32.totalorder %s1770_s22, %s1770_s22 }
 0xd3a   :  { %1032 = vrot.lane.b32.xlu1 %v913_v54, %s1833_s26  ;;  %p1777_p3 = por %p1776_p2, %p1775_p1 }
 0xd3c   :  { %p1778_p4 = pnand %p1777_p3, %p1771_p0 }
 0xdaa   :  { %v1147_v0 = vpop.xlane.xlu1 %1146 }
 0xdab   :  { %v1151_v1 = vmul.f32 0.03125, %v1147_v0 }
 0xdac   :  { %v1150_v48 = vpop.xlane.xlu0 %1149 }
 0xdad   :  { %v1153_v14 = vsub.f32 %v2113_v42, %v1151_v1  ;;  %v1152_v21 = vmul.f32 0.03125, %v1150_v48 }
 0xdae   :  { %v1017_v22 = vpop.permute.xlu1 %1016 }
 0xdaf   :  { %v1154_v49 = vsub.f32 %v2116_v46, %v1152_v21  ;;  %v1155_v50 = vmul.f32 %v1153_v14, %v1153_v14  ;;  %v1038_v53 = vsel %vm137_vm2, %v1955_v16, %v1017_v22  ;;  %v1712_v16 = vld [vmem:[%s2233_s3 + $0x8] sm:$0xff]  }
 0xdb0   :  { %1648 = vmatpush3.bf16.msra.mxu0 %v1712_v16 }
 0xdb1   :  { %v1157_v63 = vsel %vm31_vm0, %v1155_v50, 0.0  ;;  %v1156_v51 = vmul.f32 %v1154_v49, %v1154_v49 }
 0xdb2   :  { %v1025_v52 = vpop.permute.xlu1 %1024  ;;  %1158 = vadd.xlane.f32.xlu0 %v1157_v63 }
 0xdb3   :  { %v1160_v60 = vsel %vm31_vm0, %v1156_v51, 0.0  ;;  %v1041_v54 = vsel %vm1040_vm4, %v1038_v53, %v1025_v52 }
 0xdb6   :  { %v1027_v2 = vpop.permute.xlu1 %1026  ;;  %1161 = vadd.xlane.f32.xlu0 %v1160_v60 }
 0xdba   :  { %v1033_v55 = vpop.permute.xlu1 %1032 }
 0xdbb   :  { %v1044_v56 = vsel %vm1043_vm5, %v1041_v54, %v1033_v55 }
 0xdbc   :  { %1046 = vst.msk [vmem:[#allocation4] sm:$0xff] %vm31_vm0, %v1044_v56 }
 0xdcc   :  { %1018 = vrot.lane.b32.xlu0 %v2004_v7, %s1831_s20 }
 0xdd0   :  { %1034 = vrot.lane.b32.xlu0 %v2080_v57, %s1833_s26 }
 0xe3f   :  { %v1159_v58 = vpop.xlane.xlu0 %1158 }
 0xe40   :  { %v1163_v59 = vmul.f32 0.03125, %v1159_v58 }
 0xe42   :  { %v1165_v61 = vadd.f32 1e-05, %v1163_v59 }
 0xe43   :  { %v1162_v62 = vpop.xlane.xlu0 %1161 }
 0xe44   :  { %1757 = vrsqrt.f32 %v1165_v61  ;;  %v1164_v7 = vmul.f32 0.03125, %v1162_v62 }
 0xe46   :  { %v1166_v3 = vadd.f32 1e-05, %v1164_v7 }
 0xe47   :  { %v1019_v57 = vpop.permute.xlu0 %1018 }
 0xe48   :  { %1759 = vrsqrt.f32 %v1166_v3  ;;  %v1039_v4 = vsel %vm137_vm2, %v1964_v20, %v1019_v57  ;;  %v1180_v20 = vrot.slane %v1915_v26, %v1179_v13 }
 0xe49   :  { %v1042_v6 = vsel %vm1040_vm4, %v1039_v4, %v1027_v2 }
 0xe4b   :  { %v1035_v8 = vpop.permute.xlu0 %1034 }
 0xe4c   :  { %v1045_v9 = vsel %vm1043_vm5, %v1042_v6, %v1035_v8 }
 0xe4d   :  { %1047 = vst.msk [vmem:[#allocation4 + $0x8] sm:$0xff] %vm31_vm0, %v1045_v9 }
 0xe4e   :  { %v1758_v10 = vpop.eup %1757 }
 0xe4f   :  { %v1169_v12 = vmul.f32 %v1758_v10, %v1153_v14 }
 0xe51   :  { %v1175_v18 = vmul.f32 %v1174_v11, %v1169_v12 }
 0xe52   :  { %v1760_v17 = vpop.eup %1759 }
 0xe53   :  { %v1170_v19 = vmul.f32 %v1760_v17, %v1154_v49  ;;  %v1181_v25 = vadd.f32 %v1180_v20, %v1175_v18 }
 0xe55   :  { %v1176_v23 = vmul.f32 %v1174_v11, %v1170_v19 }
 0xe57   :  { %v1182_v27 = vadd.f32 %v1180_v20, %v1176_v23 }
 0xe59   :  { %v1183_v29 = vpack.c.bf16 %v1182_v27, %v1181_v25 }
 0xe5b   :  { %1650 = vmatmul.mubr.msk.bf16.vlgmr.msra.gmra.mrb[40].mxu0 %vm31_vm0, %v1183_v29 }
 0xf2e   :  { %v1241_v39 = vpop.f32.mrb[40].mxu0 }
 0xf2f   :  { %v1242_v41 = vadd.f32 %v1241_v39, %v1191_v38  ;;  %v1651_v44 = vpop.f32.mrb[41].mxu0 }
 0xf30   :  { %v1244_v45 = vpop.f32.mrb[42].mxu0 }
 0xf31   :  { %v1250_v47 = vmul.f32 0.70710677, %v1242_v41  ;;  %v1245_v43 = vadd.f32 %v1244_v45, %v1191_v38  ;;  %v1652_v0 = vpop.f32.mrb[43].mxu0  ;;  %v1248_v30 = vmul.f32 0.5, %v1242_v41 }
 0xf33   :  { %v1252_v1 = vand.u32 2147483647, %v1250_v47  ;;  %v1251_v48 = vmul.f32 0.70710677, %v1245_v43  ;;  %vm1290_vm6 = vcmp.ge.f32.partialorder %v1250_v47, 0.0  ;;  %v1249_v31 = vmul.f32 0.5, %v1245_v43 }
 0xf35   :  { %v1254_v14 = vmul.f32 0.3275911, %v1252_v1  ;;  %v1253_v15 = vand.u32 2147483647, %v1251_v48  ;;  %v1280_v50 = vsub.f32 0.0, %v1252_v1  ;;  %vm1291_vm7 = vcmp.ge.f32.partialorder %v1251_v48, 0.0 }
 0xf37   :  { %v1256_v21 = vadd.f32 1.0, %v1254_v14  ;;  %v1255_v22 = vmul.f32 0.3275911, %v1253_v15  ;;  %v1281_v63 = vsub.f32 0.0, %v1253_v15  ;;  %v1282_v26 = vmul.f32 %v1280_v50, %v1252_v1 }
 0xf39   :  { %1761 = vrcp.f32 %v1256_v21  ;;  %v1257_v49 = vadd.f32 1.0, %v1255_v22  ;;  %v1283_v53 = vmul.f32 %v1281_v63, %v1253_v15  ;;  %v1284_v54 = vmul.f32 1.442695, %v1282_v26 }
 0xf3b   :  { %1763 = vrcp.f32 %v1257_v49  ;;  %v1286_v58 = vmul.f32 1.442695, %v1283_v53 }
 0xf3c   :  { %1765 = vpow2.f32 %v1284_v54 }
 0xf3d   :  { %1767 = vpow2.f32 %v1286_v58 }
 0xf43   :  { %v1762_v51 = vpop.eup %1761 }
 0xf44   :  { %v1262_v52 = vmul.f32 1.0614054, %v1762_v51 }
 0xf45   :  { %v1764_v60 = vpop.eup %1763 }
 0xf46   :  { %v1264_v2 = vadd.f32 -1.4531521, %v1262_v52  ;;  %v1263_v55 = vmul.f32 1.0614054, %v1764_v60  ;;  %v1766_v9 = vpop.eup %1765 }
 0xf47   :  { %v1768_v13 = vpop.eup %1767 }
 0xf48   :  { %v1266_v56 = vmul.f32 %v1762_v51, %v1264_v2  ;;  %v1265_v40 = vadd.f32 -1.4531521, %v1263_v55 }
 0xf4a   :  { %v1268_v16 = vadd.f32 1.4214138, %v1266_v56  ;;  %v1267_v59 = vmul.f32 %v1764_v60, %v1265_v40 }
 0xf4c   :  { %v1270_v61 = vmul.f32 %v1762_v51, %v1268_v16  ;;  %v1269_v62 = vadd.f32 1.4214138, %v1267_v59 }
 0xf4e   :  { %v1272_v7 = vadd.f32 -0.28449672, %v1270_v61  ;;  %v1271_v3 = vmul.f32 %v1764_v60, %v1269_v62 }
 0xf50   :  { %v1274_v57 = vmul.f32 %v1762_v51, %v1272_v7  ;;  %v1273_v4 = vadd.f32 -0.28449672, %v1271_v3 }
 0xf52   :  { %v1276_v5 = vadd.f32 0.2548296, %v1274_v57  ;;  %v1275_v6 = vmul.f32 %v1764_v60, %v1273_v4 }
 0xf54   :  { %v1278_v8 = vmul.f32 %v1762_v51, %v1276_v5  ;;  %v1277_v10 = vadd.f32 0.2548296, %v1275_v6 }
 0xf56   :  { %v1288_v11 = vmul.f32 %v1766_v9, %v1278_v8  ;;  %v1279_v12 = vmul.f32 %v1764_v60, %v1277_v10 }
 0xf58   :  { %v1292_v17 = vsub.f32 1.0, %v1288_v11  ;;  %v1473_v18 = vadd.f32 -1.0, %v1288_v11  ;;  %v1289_v19 = vmul.f32 %v1768_v13, %v1279_v12 }
 0xf5a   :  { %v1296_v20 = vsel %vm1290_vm6, %v1292_v17, %v1473_v18  ;;  %v1293_v23 = vsub.f32 1.0, %v1289_v19  ;;  %v1474_v25 = vadd.f32 -1.0, %v1289_v19 }
 0xf5b   :  { %v1298_v27 = vadd.f32 1.0, %v1296_v20 }
 0xf5c   :  { %v1297_v29 = vsel %vm1291_vm7, %v1293_v23, %v1474_v25 }
 0xf5d   :  { %v1299_v33 = vadd.f32 1.0, %v1297_v29  ;;  %v1300_v34 = vmul.f32 %v1298_v27, %v1248_v30 }
 0xf5f   :  { %v1301_v35 = vmul.f32 %v1299_v33, %v1249_v31 }
 0xf61   :  { %v1302_v36 = vpack.c.bf16 %v1301_v35, %v1300_v34 }
 0xf63   :  { %1670 = vmatmul.mubr.bf16.vlgmr.msra.gmra.mrb[32].mxu1 %v1302_v36 }
 0xf64   :  { %1781 = shalt.err (!%p1778_p4)
}
 0xf65   :  { %s1782_s25 = scalar_lea.hbm %s2237_s7, 256 }
 0xf66   :  { %p1783_p5 = scmp.ne.s32.totalorder %s2237_s7, %s1782_s25  ;;  %p1786_p6 = scmp.lt.u32.totalorder %s1782_s25, %s2237_s7 }
 0xf68   :  { %p1788_p7 = pnand %p1786_p6, %p1783_p5 }
 0xf6a   :  { %1791 = shalt.err (!%p1788_p7)
}
 0xf6b   :  { %s1835_s28 = smov 128   ;;  %v1321_v32 = vsub.s32 6, %v1909_v24  ;;  %v1769_v28 = vld [vmem:[%s2235_s5] sm:$0xff]  ;;  %s1836_s8 = smov [#allocation2]  }
 0xf6c   :  { %1439 = dma.vmem_to_hbm [thread:$0]  %s1434_s21, 256, %s2237_s7, [#allocation5], %s1835_s28, %s1835_s28, %s1831_s20  }
 0xf6d   :  { %v1322_v37 = vrot.slane %v1769_v28, %v1321_v32  ;;  %s1421_s9 = sshll.u32 %s1836_s8, 4  ;;  %s1422_s9 = int_to_ptr.vmem [resolvable:$true] %s1421_s9 }
 0xf6e   :  { %s1792_s7 = scalar_lea.vmem %s1422_s9, 256  ;;  %p1797_p9 = scmp.lt.s32.totalorder %s1422_s9, %s1422_s9 }
 0xf6f   :  { %p1793_p8 = scmp.ne.s32.totalorder %s1422_s9, %s1792_s7  ;;  %p1798_p10 = scmp.lt.s32.totalorder %s1792_s7, %s1792_s7 }
 0xf71   :  { %p1799_p11 = por %p1798_p10, %p1797_p9 }
 0xf73   :  { %p1800_p12 = pnand %p1799_p11, %p1793_p8 }
0x1036   :  { %v1405_v38 = vpop.f32.mrb[32].mxu1 }
0x1037   :  { %v1406_v39 = vadd.f32 %v1405_v38, %v1322_v37  ;;  %v1671_v41 = vpop.f32.mrb[33].mxu1 }
0x1038   :  { %v1408_v44 = vpop.f32.mrb[34].mxu1 }
0x1039   :  { %v1412_v45 = vadd.f32 %v1406_v39, %v2113_v42  ;;  %v1409_v47 = vadd.f32 %v1408_v44, %v1322_v37  ;;  %v1672_v43 = vpop.f32.mrb[35].mxu1 }
0x103b   :  { %1414 = vst.msk [vmem:[#allocation2] sm:$0xff] %vm31_vm0, %v1412_v45  ;;  %v1413_v0 = vadd.f32 %v1409_v47, %v2116_v46 }
0x103d   :  { %1415 = vst.msk [vmem:[#allocation2 + $0x8] sm:$0xff] %vm31_vm0, %v1413_v0 }
0x103e   :  { %1803 = shalt.err (!%p1800_p12)
}
0x103f   :  { %s1804_s11 = scalar_lea.hbm %s2236_s6, 256 }
0x1040   :  { %p1805_p13 = scmp.ne.s32.totalorder %s2236_s6, %s1804_s11  ;;  %p1808_p0 = scmp.lt.u32.totalorder %s1804_s11, %s2236_s6 }
0x1042   :  { %p1810_p1 = pnand %p1808_p0, %p1805_p13 }
0x1044   :  { %1813 = shalt.err (!%p1810_p1)
}
0x1045   :  { %1427 = dma.vmem_to_hbm [thread:$0]  %s1422_s9, 256, %s2236_s6, [#allocation3], %s1835_s28, %s1835_s28, %s1831_s20  }
0x1046   :  { %1814 = dma.done.wait [#allocation3], 256  }
0x1047   :  { %1815 = vsyncadd [#allocation3], 4294967040 }
0x1048   :  { %1816 = dma.done.wait [#allocation5], 256  }
0x1049   :  { %1817 = vsyncadd [#allocation5], 4294967040 }
0x104a   :  { %1446 = vsyncpa [#allocation3], 1 }
0x104b   :  { %1447 = vsyncpa [#allocation5], 1 }

</bundles_post_ra>
